<compile_context>
chip_gen: v7x
topology: tpu7x:2x2x1
jax: 0.10.0
libtpu: 0.0.40
codegen_flags: <defaults>
</compile_context>

<pallas_src>
import math

import jax
import jax.numpy as jnp
from jax.experimental import pallas as pl
from jax.experimental.pallas import tpu as pltpu


def _make_kernel(lag, num_heads, seq, dim):
    Dh = dim // num_heads
    scale = 1.0 / math.sqrt(Dh)

    def kernel(x_ref, wqkv_ref, bqkv_ref, wm_ref, bm_ref, out_ref):
        xf = x_ref[0]                                     # (lag*seq, dim) bf16

        # Fused Q|K|V projection: one fat MXU matmul, f32 accumulate.
        qkv = jnp.dot(xf, wqkv_ref[...],
                      preferred_element_type=jnp.float32) + bqkv_ref[...]
        # qkv: (lag*seq, 3*dim) f32; cols [0:dim)=Q, [dim:2dim)=K, [2dim:3dim)=V

        q_rows = (lag - 1) * seq                          # query = last lag slice
        acc = jnp.zeros((seq, dim), jnp.float32)          # distributed multi_mad acc

        for h in range(num_heads):
            c0 = h * Dh
            q_h = qkv[q_rows:q_rows + seq, c0:c0 + Dh].astype(jnp.bfloat16)       # (seq, Dh)
            k_h = qkv[:, dim + c0:dim + c0 + Dh].astype(jnp.bfloat16)             # (lag*seq, Dh)
            v_h = qkv[:, 2 * dim + c0:2 * dim + c0 + Dh].astype(jnp.bfloat16)     # (lag*seq, Dh)

            # Scores for ALL lags of this head in one matmul: (seq, lag*seq).
            s_all = jnp.einsum('qd,kd->qk', q_h, k_h,
                               preferred_element_type=jnp.float32) * scale

            for l in range(lag):
                s = s_all[:, l * seq:(l + 1) * seq]                  # (seq, seq) f32
                s = s - jnp.max(s, axis=-1, keepdims=True)
                e = jnp.exp(s)
                w = e * pl.reciprocal(jnp.sum(e, axis=-1, keepdims=True),
                                      approx=True)
                o = jnp.dot(w.astype(jnp.bfloat16),
                            v_h[l * seq:(l + 1) * seq, :],           # sublane slice
                            preferred_element_type=jnp.float32)      # (seq, Dh)
                # Distributed final Linear: inter column block (l, h) hits
                # wm rows [(l*H + h)*Dh, +Dh)  (matches 'b l h s d -> b s (l h d)').
                r0 = (l * num_heads + h) * Dh
                acc = acc + jnp.dot(o.astype(jnp.bfloat16),
                                    wm_ref[r0:r0 + Dh, :],
                                    preferred_element_type=jnp.float32)

        out_ref[0] = (acc + bm_ref[...]).astype(out_ref.dtype)

    return kernel


def temporal_2_apply(x, params):
    b, lag, seq, dim = x.shape
    num_heads = params["num_heads"]

    # Wrapper-side layout plumbing (one-time XLA ops; kernel hot path is only
    # matmuls + softmax):
    x_flat = x.reshape(b, lag * seq, dim).astype(jnp.bfloat16)
    wqkv = jnp.concatenate([params["wq"], params["wk"], params["wv"]],
                           axis=1).astype(jnp.bfloat16)           # (dim, 3*dim)
    bqkv = jnp.concatenate([params["bq"], params["bk"], params["bv"]],
                           axis=1).astype(jnp.float32)            # (1, 3*dim)
    wm = params["wm"].astype(jnp.bfloat16)                        # (lag*dim, dim)
    bm = params["bm"].astype(jnp.float32)                         # (1, dim)

    kernel = _make_kernel(lag, num_heads, seq, dim)

    grid_spec = pltpu.PrefetchScalarGridSpec(
        num_scalar_prefetch=0,
        grid=(b,),
        in_specs=[
            pl.BlockSpec((1, lag * seq, dim), lambda i: (i, 0, 0)),   # x (flattened)
            pl.BlockSpec((dim, 3 * dim), lambda i: (0, 0)),           # Wq|Wk|Wv
            pl.BlockSpec((1, 3 * dim), lambda i: (0, 0)),             # bq|bk|bv
            pl.BlockSpec((lag * dim, dim), lambda i: (0, 0)),         # W_mad
            pl.BlockSpec((1, dim), lambda i: (0, 0)),                 # b_mad
        ],
        out_specs=pl.BlockSpec((1, seq, dim), lambda i: (i, 0, 0)),
    )
    return pl.pallas_call(
        kernel,
        out_shape=jax.ShapeDtypeStruct((b, seq, dim), jnp.float32),
        grid_spec=grid_spec,
        compiler_params=pltpu.CompilerParams(
            dimension_semantics=("parallel",)),
    )(x_flat, wqkv, bqkv, wm, bm)


def init_params(key, num_heads, dim, lag):
    ks = jax.random.split(key, 8)
    s = 0.05
    return {
        "num_heads": num_heads,
        "wq": jax.random.normal(ks[0], (dim, dim), jnp.float32) * s,
        "bq": jax.random.normal(ks[1], (1, dim), jnp.float32) * s,
        "wk": jax.random.normal(ks[2], (dim, dim), jnp.float32) * s,
        "bk": jax.random.normal(ks[3], (1, dim), jnp.float32) * s,
        "wv": jax.random.normal(ks[4], (dim, dim), jnp.float32) * s,
        "bv": jax.random.normal(ks[5], (1, dim), jnp.float32) * s,
        "wm": jax.random.normal(ks[6], (lag * dim, dim), jnp.float32) * s,
        "bm": jax.random.normal(ks[7], (1, dim), jnp.float32) * s,
    }


def reference(x, params):
    # Pure-JAX f32 mirror of the PyTorch forward, for verification.
    b, lag, seq, dim = x.shape
    h = params["num_heads"]
    Dh = dim // h
    wq, bq = params["wq"], params["bq"][0]
    wk, bk = params["wk"], params["bk"][0]
    wv, bv = params["wv"], params["bv"][0]
    wm, bm = params["wm"], params["bm"][0]

    q = x[:, lag - 1] @ wq + bq                              # (b, s, dim)
    k = jnp.einsum("blsd,de->blse", x, wk) + bk              # (b, l, s, dim)
    v = jnp.einsum("blsd,de->blse", x, wv) + bv
    # 'b l s (h d) -> b l h s d'
    q5 = q.reshape(b, seq, h, Dh).transpose(0, 2, 1, 3)      # (b, h, s, Dh)
    k5 = k.reshape(b, lag, seq, h, Dh).transpose(0, 1, 3, 2, 4)
    v5 = v.reshape(b, lag, seq, h, Dh).transpose(0, 1, 3, 2, 4)
    scores = jnp.einsum("bhqd,blhkd->blhqk", q5, k5) / math.sqrt(Dh)
    scores = scores - jnp.max(scores, axis=-1, keepdims=True)
    w = jax.nn.softmax(scores, axis=-1)
    inter = jnp.einsum("blhqk,blhkd->blhqd", w, v5)          # (b, l, h, s, Dh)
    # 'b l h s d -> b s (l h d)'
    inter = inter.transpose(0, 3, 1, 2, 4).reshape(b, seq, lag * h * Dh)
    return inter @ wm + bm


if __name__ == "__main__":
    B, LAG, SEQ, DIM, HEADS = 2, 5, 8, 32, 4
    key = jax.random.PRNGKey(0)
    kx, kp = jax.random.split(key)
    x = jax.random.normal(kx, (B, LAG, SEQ, DIM), jnp.float32)
    params = init_params(kp, HEADS, DIM, LAG)

    out = temporal_2_apply(x, params)
    out = jax.block_until_ready(out)

    ref = reference(x, params)
    assert out.shape == (B, SEQ, DIM), out.shape
    err = float(jnp.max(jnp.abs(out - ref)))
    # Kernel uses bf16 matmul operands (f32 accumulation), so compare against
    # the f32 reference with a bf16-appropriate tolerance.
    assert jnp.allclose(out, ref, atol=2e-2, rtol=2e-2), err
    print("KERNEL_OK")
</pallas_src>

<mosaic_0001>
module attributes {stable_mosaic.version = 11 : i64} {
  func.func @kernel(%arg0: i32, %arg1: memref<1x40x32xbf16, #tpu.memory_space<vmem>>, %arg2: memref<32x96xbf16, #tpu.memory_space<vmem>>, %arg3: memref<1x96xf32, #tpu.memory_space<vmem>>, %arg4: memref<160x32xbf16, #tpu.memory_space<vmem>>, %arg5: memref<1x32xf32, #tpu.memory_space<vmem>>, %arg6: memref<1x8x32xf32, #tpu.memory_space<vmem>>) attributes {dimension_semantics = [#tpu.dimension_semantics<parallel>], iteration_bounds = array<i64: 2>, scalar_prefetch = 0 : i64, scratch_operands = 0 : i64, tpu.core_type = #tpu.core_type<tc>, window_params = [{transform_indices = @transform_0, window_bounds = array<i64: 1, 40, 32>}, {pipeline_mode = #tpu.pipeline_mode<synchronous>, transform_indices = @transform_1, window_bounds = array<i64: 32, 96>}, {pipeline_mode = #tpu.pipeline_mode<synchronous>, transform_indices = @transform_2, window_bounds = array<i64: 1, 96>}, {pipeline_mode = #tpu.pipeline_mode<synchronous>, transform_indices = @transform_3, window_bounds = array<i64: 160, 32>}, {pipeline_mode = #tpu.pipeline_mode<synchronous>, transform_indices = @transform_4, window_bounds = array<i64: 1, 32>}, {transform_indices = @transform_5, window_bounds = array<i64: 1, 8, 32>}]} {
    %c0 = arith.constant 0 : index
    %c0_0 = arith.constant 0 : index
    %c0_1 = arith.constant 0 : index
    %0 = vector.load %arg1[%c0, %c0_0, %c0_1] : memref<1x40x32xbf16, #tpu.memory_space<vmem>>, vector<1x40x32xbf16>
    %1 = vector.shape_cast %0 : vector<1x40x32xbf16> to vector<40x32xbf16>
    %c0_2 = arith.constant 0 : index
    %c0_3 = arith.constant 0 : index
    %2 = vector.load %arg2[%c0_2, %c0_3] : memref<32x96xbf16, #tpu.memory_space<vmem>>, vector<32x96xbf16>
    %cst = arith.constant dense<0.000000e+00> : vector<40x96xf32>
    %3 = tpu.matmul %1, %2, %cst {dimension_numbers = #tpu.dot_dimension_numbers<[1], [0], [0], [1], [0, 0, 1, 1], [], []>} : vector<40x32xbf16>, vector<32x96xbf16>, vector<40x96xf32> -> vector<40x96xf32>
    %c0_4 = arith.constant 0 : index
    %c0_5 = arith.constant 0 : index
    %4 = vector.load %arg3[%c0_4, %c0_5] : memref<1x96xf32, #tpu.memory_space<vmem>>, vector<1x96xf32>
    %5 = vector.broadcast %4 : vector<1x96xf32> to vector<40x96xf32>
    %6 = arith.addf %3, %5 : vector<40x96xf32>
    %cst_6 = arith.constant 0.000000e+00 : f32
    %7 = vector.broadcast %cst_6 : f32 to vector<8x32xf32>
    %8 = vector.extract_strided_slice %6 {offsets = [32, 0], sizes = [8, 8], strides = [1, 1]} : vector<40x96xf32> to vector<8x8xf32>
    %9 = arith.truncf %8 : vector<8x8xf32> to vector<8x8xbf16>
    %10 = vector.extract_strided_slice %6 {offsets = [0, 32], sizes = [40, 8], strides = [1, 1]} : vector<40x96xf32> to vector<40x8xf32>
    %11 = arith.truncf %10 : vector<40x8xf32> to vector<40x8xbf16>
    %12 = vector.extract_strided_slice %6 {offsets = [0, 64], sizes = [40, 8], strides = [1, 1]} : vector<40x96xf32> to vector<40x8xf32>
    %13 = arith.truncf %12 : vector<40x8xf32> to vector<40x8xbf16>
    "tpu.trace_start"() <{level = 10 : i32, message = "qd,kd->qk"}> : () -> ()
    %cst_7 = arith.constant dense<0.000000e+00> : vector<8x40xf32>
    %14 = tpu.matmul %9, %11, %cst_7 {dimension_numbers = #tpu.dot_dimension_numbers<[1], [1], [0], [0], [0, 0, 1, 0], [], []>} : vector<8x8xbf16>, vector<40x8xbf16>, vector<8x40xf32> -> vector<8x40xf32>
    "tpu.trace_stop"() : () -> ()
    %cst_8 = arith.constant 0.353553385 : f32
    %15 = vector.broadcast %cst_8 : f32 to vector<8x40xf32>
    %16 = arith.mulf %14, %15 : vector<8x40xf32>
    %17 = vector.extract_strided_slice %16 {offsets = [0, 0], sizes = [8, 8], strides = [1, 1]} : vector<8x40xf32> to vector<8x8xf32>
    %cst_9 = arith.constant dense<0xFF800000> : vector<8xf32>
    %18 = vector.multi_reduction <maximumf>, %17, %cst_9 [1] : vector<8x8xf32> to vector<8xf32>
    %19 = vector.shape_cast %18 : vector<8xf32> to vector<8x1xf32>
    %20 = vector.broadcast %19 : vector<8x1xf32> to vector<8x8xf32>
    %21 = arith.subf %17, %20 : vector<8x8xf32>
    %22 = math.exp %21 : vector<8x8xf32>
    %cst_10 = arith.constant dense<0.000000e+00> : vector<8xf32>
    %23 = vector.multi_reduction <add>, %22, %cst_10 [1] : vector<8x8xf32> to vector<8xf32>
    %24 = vector.shape_cast %23 : vector<8xf32> to vector<8x1xf32>
    %25 = tpu.reciprocal %24 {approx = true} : vector<8x1xf32> -> vector<8x1xf32>
    %26 = vector.broadcast %25 : vector<8x1xf32> to vector<8x8xf32>
    %27 = arith.mulf %22, %26 : vector<8x8xf32>
    %28 = arith.truncf %27 : vector<8x8xf32> to vector<8x8xbf16>
    %29 = vector.extract_strided_slice %13 {offsets = [0, 0], sizes = [8, 8], strides = [1, 1]} : vector<40x8xbf16> to vector<8x8xbf16>
    %cst_11 = arith.constant dense<0.000000e+00> : vector<8x8xf32>
    %30 = tpu.matmul %28, %29, %cst_11 {dimension_numbers = #tpu.dot_dimension_numbers<[1], [0], [0], [1], [0, 0, 1, 1], [], []>} : vector<8x8xbf16>, vector<8x8xbf16>, vector<8x8xf32> -> vector<8x8xf32>
    %31 = arith.truncf %30 : vector<8x8xf32> to vector<8x8xbf16>
    %c0_12 = arith.constant 0 : index
    %c0_13 = arith.constant 0 : index
    %32 = vector.load %arg4[%c0_12, %c0_13] : memref<160x32xbf16, #tpu.memory_space<vmem>>, vector<8x32xbf16>
    %cst_14 = arith.constant dense<0.000000e+00> : vector<8x32xf32>
    %33 = tpu.matmul %31, %32, %cst_14 {dimension_numbers = #tpu.dot_dimension_numbers<[1], [0], [0], [1], [0, 0, 1, 1], [], []>} : vector<8x8xbf16>, vector<8x32xbf16>, vector<8x32xf32> -> vector<8x32xf32>
    %34 = arith.addf %7, %33 : vector<8x32xf32>
    %35 = vector.extract_strided_slice %16 {offsets = [0, 8], sizes = [8, 8], strides = [1, 1]} : vector<8x40xf32> to vector<8x8xf32>
    %cst_15 = arith.constant dense<0xFF800000> : vector<8xf32>
    %36 = vector.multi_reduction <maximumf>, %35, %cst_15 [1] : vector<8x8xf32> to vector<8xf32>
    %37 = vector.shape_cast %36 : vector<8xf32> to vector<8x1xf32>
    %38 = vector.broadcast %37 : vector<8x1xf32> to vector<8x8xf32>
    %39 = arith.subf %35, %38 : vector<8x8xf32>
    %40 = math.exp %39 : vector<8x8xf32>
    %cst_16 = arith.constant dense<0.000000e+00> : vector<8xf32>
    %41 = vector.multi_reduction <add>, %40, %cst_16 [1] : vector<8x8xf32> to vector<8xf32>
    %42 = vector.shape_cast %41 : vector<8xf32> to vector<8x1xf32>
    %43 = tpu.reciprocal %42 {approx = true} : vector<8x1xf32> -> vector<8x1xf32>
    %44 = vector.broadcast %43 : vector<8x1xf32> to vector<8x8xf32>
    %45 = arith.mulf %40, %44 : vector<8x8xf32>
    %46 = arith.truncf %45 : vector<8x8xf32> to vector<8x8xbf16>
    %47 = vector.extract_strided_slice %13 {offsets = [8, 0], sizes = [8, 8], strides = [1, 1]} : vector<40x8xbf16> to vector<8x8xbf16>
    %cst_17 = arith.constant dense<0.000000e+00> : vector<8x8xf32>
    %48 = tpu.matmul %46, %47, %cst_17 {dimension_numbers = #tpu.dot_dimension_numbers<[1], [0], [0], [1], [0, 0, 1, 1], [], []>} : vector<8x8xbf16>, vector<8x8xbf16>, vector<8x8xf32> -> vector<8x8xf32>
    %49 = arith.truncf %48 : vector<8x8xf32> to vector<8x8xbf16>
    %c32 = arith.constant 32 : index
    %c0_18 = arith.constant 0 : index
    %50 = vector.load %arg4[%c32, %c0_18] : memref<160x32xbf16, #tpu.memory_space<vmem>>, vector<8x32xbf16>
    %cst_19 = arith.constant dense<0.000000e+00> : vector<8x32xf32>
    %51 = tpu.matmul %49, %50, %cst_19 {dimension_numbers = #tpu.dot_dimension_numbers<[1], [0], [0], [1], [0, 0, 1, 1], [], []>} : vector<8x8xbf16>, vector<8x32xbf16>, vector<8x32xf32> -> vector<8x32xf32>
    %52 = arith.addf %34, %51 : vector<8x32xf32>
    %53 = vector.extract_strided_slice %16 {offsets = [0, 16], sizes = [8, 8], strides = [1, 1]} : vector<8x40xf32> to vector<8x8xf32>
    %cst_20 = arith.constant dense<0xFF800000> : vector<8xf32>
    %54 = vector.multi_reduction <maximumf>, %53, %cst_20 [1] : vector<8x8xf32> to vector<8xf32>
    %55 = vector.shape_cast %54 : vector<8xf32> to vector<8x1xf32>
    %56 = vector.broadcast %55 : vector<8x1xf32> to vector<8x8xf32>
    %57 = arith.subf %53, %56 : vector<8x8xf32>
    %58 = math.exp %57 : vector<8x8xf32>
    %cst_21 = arith.constant dense<0.000000e+00> : vector<8xf32>
    %59 = vector.multi_reduction <add>, %58, %cst_21 [1] : vector<8x8xf32> to vector<8xf32>
    %60 = vector.shape_cast %59 : vector<8xf32> to vector<8x1xf32>
    %61 = tpu.reciprocal %60 {approx = true} : vector<8x1xf32> -> vector<8x1xf32>
    %62 = vector.broadcast %61 : vector<8x1xf32> to vector<8x8xf32>
    %63 = arith.mulf %58, %62 : vector<8x8xf32>
    %64 = arith.truncf %63 : vector<8x8xf32> to vector<8x8xbf16>
    %65 = vector.extract_strided_slice %13 {offsets = [16, 0], sizes = [8, 8], strides = [1, 1]} : vector<40x8xbf16> to vector<8x8xbf16>
    %cst_22 = arith.constant dense<0.000000e+00> : vector<8x8xf32>
    %66 = tpu.matmul %64, %65, %cst_22 {dimension_numbers = #tpu.dot_dimension_numbers<[1], [0], [0], [1], [0, 0, 1, 1], [], []>} : vector<8x8xbf16>, vector<8x8xbf16>, vector<8x8xf32> -> vector<8x8xf32>
    %67 = arith.truncf %66 : vector<8x8xf32> to vector<8x8xbf16>
    %c64 = arith.constant 64 : index
    %c0_23 = arith.constant 0 : index
    %68 = vector.load %arg4[%c64, %c0_23] : memref<160x32xbf16, #tpu.memory_space<vmem>>, vector<8x32xbf16>
    %cst_24 = arith.constant dense<0.000000e+00> : vector<8x32xf32>
    %69 = tpu.matmul %67, %68, %cst_24 {dimension_numbers = #tpu.dot_dimension_numbers<[1], [0], [0], [1], [0, 0, 1, 1], [], []>} : vector<8x8xbf16>, vector<8x32xbf16>, vector<8x32xf32> -> vector<8x32xf32>
    %70 = arith.addf %52, %69 : vector<8x32xf32>
    %71 = vector.extract_strided_slice %16 {offsets = [0, 24], sizes = [8, 8], strides = [1, 1]} : vector<8x40xf32> to vector<8x8xf32>
    %cst_25 = arith.constant dense<0xFF800000> : vector<8xf32>
    %72 = vector.multi_reduction <maximumf>, %71, %cst_25 [1] : vector<8x8xf32> to vector<8xf32>
    %73 = vector.shape_cast %72 : vector<8xf32> to vector<8x1xf32>
    %74 = vector.broadcast %73 : vector<8x1xf32> to vector<8x8xf32>
    %75 = arith.subf %71, %74 : vector<8x8xf32>
    %76 = math.exp %75 : vector<8x8xf32>
    %cst_26 = arith.constant dense<0.000000e+00> : vector<8xf32>
    %77 = vector.multi_reduction <add>, %76, %cst_26 [1] : vector<8x8xf32> to vector<8xf32>
    %78 = vector.shape_cast %77 : vector<8xf32> to vector<8x1xf32>
    %79 = tpu.reciprocal %78 {approx = true} : vector<8x1xf32> -> vector<8x1xf32>
    %80 = vector.broadcast %79 : vector<8x1xf32> to vector<8x8xf32>
    %81 = arith.mulf %76, %80 : vector<8x8xf32>
    %82 = arith.truncf %81 : vector<8x8xf32> to vector<8x8xbf16>
    %83 = vector.extract_strided_slice %13 {offsets = [24, 0], sizes = [8, 8], strides = [1, 1]} : vector<40x8xbf16> to vector<8x8xbf16>
    %cst_27 = arith.constant dense<0.000000e+00> : vector<8x8xf32>
    %84 = tpu.matmul %82, %83, %cst_27 {dimension_numbers = #tpu.dot_dimension_numbers<[1], [0], [0], [1], [0, 0, 1, 1], [], []>} : vector<8x8xbf16>, vector<8x8xbf16>, vector<8x8xf32> -> vector<8x8xf32>
    %85 = arith.truncf %84 : vector<8x8xf32> to vector<8x8xbf16>
    %c96 = arith.constant 96 : index
    %c0_28 = arith.constant 0 : index
    %86 = vector.load %arg4[%c96, %c0_28] : memref<160x32xbf16, #tpu.memory_space<vmem>>, vector<8x32xbf16>
    %cst_29 = arith.constant dense<0.000000e+00> : vector<8x32xf32>
    %87 = tpu.matmul %85, %86, %cst_29 {dimension_numbers = #tpu.dot_dimension_numbers<[1], [0], [0], [1], [0, 0, 1, 1], [], []>} : vector<8x8xbf16>, vector<8x32xbf16>, vector<8x32xf32> -> vector<8x32xf32>
    %88 = arith.addf %70, %87 : vector<8x32xf32>
    %89 = vector.extract_strided_slice %16 {offsets = [0, 32], sizes = [8, 8], strides = [1, 1]} : vector<8x40xf32> to vector<8x8xf32>
    %cst_30 = arith.constant dense<0xFF800000> : vector<8xf32>
    %90 = vector.multi_reduction <maximumf>, %89, %cst_30 [1] : vector<8x8xf32> to vector<8xf32>
    %91 = vector.shape_cast %90 : vector<8xf32> to vector<8x1xf32>
    %92 = vector.broadcast %91 : vector<8x1xf32> to vector<8x8xf32>
    %93 = arith.subf %89, %92 : vector<8x8xf32>
    %94 = math.exp %93 : vector<8x8xf32>
    %cst_31 = arith.constant dense<0.000000e+00> : vector<8xf32>
    %95 = vector.multi_reduction <add>, %94, %cst_31 [1] : vector<8x8xf32> to vector<8xf32>
    %96 = vector.shape_cast %95 : vector<8xf32> to vector<8x1xf32>
    %97 = tpu.reciprocal %96 {approx = true} : vector<8x1xf32> -> vector<8x1xf32>
    %98 = vector.broadcast %97 : vector<8x1xf32> to vector<8x8xf32>
    %99 = arith.mulf %94, %98 : vector<8x8xf32>
    %100 = arith.truncf %99 : vector<8x8xf32> to vector<8x8xbf16>
    %101 = vector.extract_strided_slice %13 {offsets = [32, 0], sizes = [8, 8], strides = [1, 1]} : vector<40x8xbf16> to vector<8x8xbf16>
    %cst_32 = arith.constant dense<0.000000e+00> : vector<8x8xf32>
    %102 = tpu.matmul %100, %101, %cst_32 {dimension_numbers = #tpu.dot_dimension_numbers<[1], [0], [0], [1], [0, 0, 1, 1], [], []>} : vector<8x8xbf16>, vector<8x8xbf16>, vector<8x8xf32> -> vector<8x8xf32>
    %103 = arith.truncf %102 : vector<8x8xf32> to vector<8x8xbf16>
    %c128 = arith.constant 128 : index
    %c0_33 = arith.constant 0 : index
    %104 = vector.load %arg4[%c128, %c0_33] : memref<160x32xbf16, #tpu.memory_space<vmem>>, vector<8x32xbf16>
    %cst_34 = arith.constant dense<0.000000e+00> : vector<8x32xf32>
    %105 = tpu.matmul %103, %104, %cst_34 {dimension_numbers = #tpu.dot_dimension_numbers<[1], [0], [0], [1], [0, 0, 1, 1], [], []>} : vector<8x8xbf16>, vector<8x32xbf16>, vector<8x32xf32> -> vector<8x32xf32>
    %106 = arith.addf %88, %105 : vector<8x32xf32>
    %107 = vector.extract_strided_slice %6 {offsets = [32, 8], sizes = [8, 8], strides = [1, 1]} : vector<40x96xf32> to vector<8x8xf32>
    %108 = arith.truncf %107 : vector<8x8xf32> to vector<8x8xbf16>
    %109 = vector.extract_strided_slice %6 {offsets = [0, 40], sizes = [40, 8], strides = [1, 1]} : vector<40x96xf32> to vector<40x8xf32>
    %110 = arith.truncf %109 : vector<40x8xf32> to vector<40x8xbf16>
    %111 = vector.extract_strided_slice %6 {offsets = [0, 72], sizes = [40, 8], strides = [1, 1]} : vector<40x96xf32> to vector<40x8xf32>
    %112 = arith.truncf %111 : vector<40x8xf32> to vector<40x8xbf16>
    "tpu.trace_start"() <{level = 10 : i32, message = "qd,kd->qk"}> : () -> ()
    %cst_35 = arith.constant dense<0.000000e+00> : vector<8x40xf32>
    %113 = tpu.matmul %108, %110, %cst_35 {dimension_numbers = #tpu.dot_dimension_numbers<[1], [1], [0], [0], [0, 0, 1, 0], [], []>} : vector<8x8xbf16>, vector<40x8xbf16>, vector<8x40xf32> -> vector<8x40xf32>
    "tpu.trace_stop"() : () -> ()
    %cst_36 = arith.constant 0.353553385 : f32
    %114 = vector.broadcast %cst_36 : f32 to vector<8x40xf32>
    %115 = arith.mulf %113, %114 : vector<8x40xf32>
    %116 = vector.extract_strided_slice %115 {offsets = [0, 0], sizes = [8, 8], strides = [1, 1]} : vector<8x40xf32> to vector<8x8xf32>
    %cst_37 = arith.constant dense<0xFF800000> : vector<8xf32>
    %117 = vector.multi_reduction <maximumf>, %116, %cst_37 [1] : vector<8x8xf32> to vector<8xf32>
    %118 = vector.shape_cast %117 : vector<8xf32> to vector<8x1xf32>
    %119 = vector.broadcast %118 : vector<8x1xf32> to vector<8x8xf32>
    %120 = arith.subf %116, %119 : vector<8x8xf32>
    %121 = math.exp %120 : vector<8x8xf32>
    %cst_38 = arith.constant dense<0.000000e+00> : vector<8xf32>
    %122 = vector.multi_reduction <add>, %121, %cst_38 [1] : vector<8x8xf32> to vector<8xf32>
    %123 = vector.shape_cast %122 : vector<8xf32> to vector<8x1xf32>
    %124 = tpu.reciprocal %123 {approx = true} : vector<8x1xf32> -> vector<8x1xf32>
    %125 = vector.broadcast %124 : vector<8x1xf32> to vector<8x8xf32>
    %126 = arith.mulf %121, %125 : vector<8x8xf32>
    %127 = arith.truncf %126 : vector<8x8xf32> to vector<8x8xbf16>
    %128 = vector.extract_strided_slice %112 {offsets = [0, 0], sizes = [8, 8], strides = [1, 1]} : vector<40x8xbf16> to vector<8x8xbf16>
    %cst_39 = arith.constant dense<0.000000e+00> : vector<8x8xf32>
    %129 = tpu.matmul %127, %128, %cst_39 {dimension_numbers = #tpu.dot_dimension_numbers<[1], [0], [0], [1], [0, 0, 1, 1], [], []>} : vector<8x8xbf16>, vector<8x8xbf16>, vector<8x8xf32> -> vector<8x8xf32>
    %130 = arith.truncf %129 : vector<8x8xf32> to vector<8x8xbf16>
    %c8 = arith.constant 8 : index
    %c0_40 = arith.constant 0 : index
    %131 = vector.load %arg4[%c8, %c0_40] : memref<160x32xbf16, #tpu.memory_space<vmem>>, vector<8x32xbf16>
    %cst_41 = arith.constant dense<0.000000e+00> : vector<8x32xf32>
    %132 = tpu.matmul %130, %131, %cst_41 {dimension_numbers = #tpu.dot_dimension_numbers<[1], [0], [0], [1], [0, 0, 1, 1], [], []>} : vector<8x8xbf16>, vector<8x32xbf16>, vector<8x32xf32> -> vector<8x32xf32>
    %133 = arith.addf %106, %132 : vector<8x32xf32>
    %134 = vector.extract_strided_slice %115 {offsets = [0, 8], sizes = [8, 8], strides = [1, 1]} : vector<8x40xf32> to vector<8x8xf32>
    %cst_42 = arith.constant dense<0xFF800000> : vector<8xf32>
    %135 = vector.multi_reduction <maximumf>, %134, %cst_42 [1] : vector<8x8xf32> to vector<8xf32>
    %136 = vector.shape_cast %135 : vector<8xf32> to vector<8x1xf32>
    %137 = vector.broadcast %136 : vector<8x1xf32> to vector<8x8xf32>
    %138 = arith.subf %134, %137 : vector<8x8xf32>
    %139 = math.exp %138 : vector<8x8xf32>
    %cst_43 = arith.constant dense<0.000000e+00> : vector<8xf32>
    %140 = vector.multi_reduction <add>, %139, %cst_43 [1] : vector<8x8xf32> to vector<8xf32>
    %141 = vector.shape_cast %140 : vector<8xf32> to vector<8x1xf32>
    %142 = tpu.reciprocal %141 {approx = true} : vector<8x1xf32> -> vector<8x1xf32>
    %143 = vector.broadcast %142 : vector<8x1xf32> to vector<8x8xf32>
    %144 = arith.mulf %139, %143 : vector<8x8xf32>
    %145 = arith.truncf %144 : vector<8x8xf32> to vector<8x8xbf16>
    %146 = vector.extract_strided_slice %112 {offsets = [8, 0], sizes = [8, 8], strides = [1, 1]} : vector<40x8xbf16> to vector<8x8xbf16>
    %cst_44 = arith.constant dense<0.000000e+00> : vector<8x8xf32>
    %147 = tpu.matmul %145, %146, %cst_44 {dimension_numbers = #tpu.dot_dimension_numbers<[1], [0], [0], [1], [0, 0, 1, 1], [], []>} : vector<8x8xbf16>, vector<8x8xbf16>, vector<8x8xf32> -> vector<8x8xf32>
    %148 = arith.truncf %147 : vector<8x8xf32> to vector<8x8xbf16>
    %c40 = arith.constant 40 : index
    %c0_45 = arith.constant 0 : index
    %149 = vector.load %arg4[%c40, %c0_45] : memref<160x32xbf16, #tpu.memory_space<vmem>>, vector<8x32xbf16>
    %cst_46 = arith.constant dense<0.000000e+00> : vector<8x32xf32>
    %150 = tpu.matmul %148, %149, %cst_46 {dimension_numbers = #tpu.dot_dimension_numbers<[1], [0], [0], [1], [0, 0, 1, 1], [], []>} : vector<8x8xbf16>, vector<8x32xbf16>, vector<8x32xf32> -> vector<8x32xf32>
    %151 = arith.addf %133, %150 : vector<8x32xf32>
    %152 = vector.extract_strided_slice %115 {offsets = [0, 16], sizes = [8, 8], strides = [1, 1]} : vector<8x40xf32> to vector<8x8xf32>
    %cst_47 = arith.constant dense<0xFF800000> : vector<8xf32>
    %153 = vector.multi_reduction <maximumf>, %152, %cst_47 [1] : vector<8x8xf32> to vector<8xf32>
    %154 = vector.shape_cast %153 : vector<8xf32> to vector<8x1xf32>
    %155 = vector.broadcast %154 : vector<8x1xf32> to vector<8x8xf32>
    %156 = arith.subf %152, %155 : vector<8x8xf32>
    %157 = math.exp %156 : vector<8x8xf32>
    %cst_48 = arith.constant dense<0.000000e+00> : vector<8xf32>
    %158 = vector.multi_reduction <add>, %157, %cst_48 [1] : vector<8x8xf32> to vector<8xf32>
    %159 = vector.shape_cast %158 : vector<8xf32> to vector<8x1xf32>
    %160 = tpu.reciprocal %159 {approx = true} : vector<8x1xf32> -> vector<8x1xf32>
    %161 = vector.broadcast %160 : vector<8x1xf32> to vector<8x8xf32>
    %162 = arith.mulf %157, %161 : vector<8x8xf32>
    %163 = arith.truncf %162 : vector<8x8xf32> to vector<8x8xbf16>
    %164 = vector.extract_strided_slice %112 {offsets = [16, 0], sizes = [8, 8], strides = [1, 1]} : vector<40x8xbf16> to vector<8x8xbf16>
    %cst_49 = arith.constant dense<0.000000e+00> : vector<8x8xf32>
    %165 = tpu.matmul %163, %164, %cst_49 {dimension_numbers = #tpu.dot_dimension_numbers<[1], [0], [0], [1], [0, 0, 1, 1], [], []>} : vector<8x8xbf16>, vector<8x8xbf16>, vector<8x8xf32> -> vector<8x8xf32>
    %166 = arith.truncf %165 : vector<8x8xf32> to vector<8x8xbf16>
    %c72 = arith.constant 72 : index
    %c0_50 = arith.constant 0 : index
    %167 = vector.load %arg4[%c72, %c0_50] : memref<160x32xbf16, #tpu.memory_space<vmem>>, vector<8x32xbf16>
    %cst_51 = arith.constant dense<0.000000e+00> : vector<8x32xf32>
    %168 = tpu.matmul %166, %167, %cst_51 {dimension_numbers = #tpu.dot_dimension_numbers<[1], [0], [0], [1], [0, 0, 1, 1], [], []>} : vector<8x8xbf16>, vector<8x32xbf16>, vector<8x32xf32> -> vector<8x32xf32>
    %169 = arith.addf %151, %168 : vector<8x32xf32>
    %170 = vector.extract_strided_slice %115 {offsets = [0, 24], sizes = [8, 8], strides = [1, 1]} : vector<8x40xf32> to vector<8x8xf32>
    %cst_52 = arith.constant dense<0xFF800000> : vector<8xf32>
    %171 = vector.multi_reduction <maximumf>, %170, %cst_52 [1] : vector<8x8xf32> to vector<8xf32>
    %172 = vector.shape_cast %171 : vector<8xf32> to vector<8x1xf32>
    %173 = vector.broadcast %172 : vector<8x1xf32> to vector<8x8xf32>
    %174 = arith.subf %170, %173 : vector<8x8xf32>
    %175 = math.exp %174 : vector<8x8xf32>
    %cst_53 = arith.constant dense<0.000000e+00> : vector<8xf32>
    %176 = vector.multi_reduction <add>, %175, %cst_53 [1] : vector<8x8xf32> to vector<8xf32>
    %177 = vector.shape_cast %176 : vector<8xf32> to vector<8x1xf32>
    %178 = tpu.reciprocal %177 {approx = true} : vector<8x1xf32> -> vector<8x1xf32>
    %179 = vector.broadcast %178 : vector<8x1xf32> to vector<8x8xf32>
    %180 = arith.mulf %175, %179 : vector<8x8xf32>
    %181 = arith.truncf %180 : vector<8x8xf32> to vector<8x8xbf16>
    %182 = vector.extract_strided_slice %112 {offsets = [24, 0], sizes = [8, 8], strides = [1, 1]} : vector<40x8xbf16> to vector<8x8xbf16>
    %cst_54 = arith.constant dense<0.000000e+00> : vector<8x8xf32>
    %183 = tpu.matmul %181, %182, %cst_54 {dimension_numbers = #tpu.dot_dimension_numbers<[1], [0], [0], [1], [0, 0, 1, 1], [], []>} : vector<8x8xbf16>, vector<8x8xbf16>, vector<8x8xf32> -> vector<8x8xf32>
    %184 = arith.truncf %183 : vector<8x8xf32> to vector<8x8xbf16>
    %c104 = arith.constant 104 : index
    %c0_55 = arith.constant 0 : index
    %185 = vector.load %arg4[%c104, %c0_55] : memref<160x32xbf16, #tpu.memory_space<vmem>>, vector<8x32xbf16>
    %cst_56 = arith.constant dense<0.000000e+00> : vector<8x32xf32>
    %186 = tpu.matmul %184, %185, %cst_56 {dimension_numbers = #tpu.dot_dimension_numbers<[1], [0], [0], [1], [0, 0, 1, 1], [], []>} : vector<8x8xbf16>, vector<8x32xbf16>, vector<8x32xf32> -> vector<8x32xf32>
    %187 = arith.addf %169, %186 : vector<8x32xf32>
    %188 = vector.extract_strided_slice %115 {offsets = [0, 32], sizes = [8, 8], strides = [1, 1]} : vector<8x40xf32> to vector<8x8xf32>
    %cst_57 = arith.constant dense<0xFF800000> : vector<8xf32>
    %189 = vector.multi_reduction <maximumf>, %188, %cst_57 [1] : vector<8x8xf32> to vector<8xf32>
    %190 = vector.shape_cast %189 : vector<8xf32> to vector<8x1xf32>
    %191 = vector.broadcast %190 : vector<8x1xf32> to vector<8x8xf32>
    %192 = arith.subf %188, %191 : vector<8x8xf32>
    %193 = math.exp %192 : vector<8x8xf32>
    %cst_58 = arith.constant dense<0.000000e+00> : vector<8xf32>
    %194 = vector.multi_reduction <add>, %193, %cst_58 [1] : vector<8x8xf32> to vector<8xf32>
    %195 = vector.shape_cast %194 : vector<8xf32> to vector<8x1xf32>
    %196 = tpu.reciprocal %195 {approx = true} : vector<8x1xf32> -> vector<8x1xf32>
    %197 = vector.broadcast %196 : vector<8x1xf32> to vector<8x8xf32>
    %198 = arith.mulf %193, %197 : vector<8x8xf32>
    %199 = arith.truncf %198 : vector<8x8xf32> to vector<8x8xbf16>
    %200 = vector.extract_strided_slice %112 {offsets = [32, 0], sizes = [8, 8], strides = [1, 1]} : vector<40x8xbf16> to vector<8x8xbf16>
    %cst_59 = arith.constant dense<0.000000e+00> : vector<8x8xf32>
    %201 = tpu.matmul %199, %200, %cst_59 {dimension_numbers = #tpu.dot_dimension_numbers<[1], [0], [0], [1], [0, 0, 1, 1], [], []>} : vector<8x8xbf16>, vector<8x8xbf16>, vector<8x8xf32> -> vector<8x8xf32>
    %202 = arith.truncf %201 : vector<8x8xf32> to vector<8x8xbf16>
    %c136 = arith.constant 136 : index
    %c0_60 = arith.constant 0 : index
    %203 = vector.load %arg4[%c136, %c0_60] : memref<160x32xbf16, #tpu.memory_space<vmem>>, vector<8x32xbf16>
    %cst_61 = arith.constant dense<0.000000e+00> : vector<8x32xf32>
    %204 = tpu.matmul %202, %203, %cst_61 {dimension_numbers = #tpu.dot_dimension_numbers<[1], [0], [0], [1], [0, 0, 1, 1], [], []>} : vector<8x8xbf16>, vector<8x32xbf16>, vector<8x32xf32> -> vector<8x32xf32>
    %205 = arith.addf %187, %204 : vector<8x32xf32>
    %206 = vector.extract_strided_slice %6 {offsets = [32, 16], sizes = [8, 8], strides = [1, 1]} : vector<40x96xf32> to vector<8x8xf32>
    %207 = arith.truncf %206 : vector<8x8xf32> to vector<8x8xbf16>
    %208 = vector.extract_strided_slice %6 {offsets = [0, 48], sizes = [40, 8], strides = [1, 1]} : vector<40x96xf32> to vector<40x8xf32>
    %209 = arith.truncf %208 : vector<40x8xf32> to vector<40x8xbf16>
    %210 = vector.extract_strided_slice %6 {offsets = [0, 80], sizes = [40, 8], strides = [1, 1]} : vector<40x96xf32> to vector<40x8xf32>
    %211 = arith.truncf %210 : vector<40x8xf32> to vector<40x8xbf16>
    "tpu.trace_start"() <{level = 10 : i32, message = "qd,kd->qk"}> : () -> ()
    %cst_62 = arith.constant dense<0.000000e+00> : vector<8x40xf32>
    %212 = tpu.matmul %207, %209, %cst_62 {dimension_numbers = #tpu.dot_dimension_numbers<[1], [1], [0], [0], [0, 0, 1, 0], [], []>} : vector<8x8xbf16>, vector<40x8xbf16>, vector<8x40xf32> -> vector<8x40xf32>
    "tpu.trace_stop"() : () -> ()
    %cst_63 = arith.constant 0.353553385 : f32
    %213 = vector.broadcast %cst_63 : f32 to vector<8x40xf32>
    %214 = arith.mulf %212, %213 : vector<8x40xf32>
    %215 = vector.extract_strided_slice %214 {offsets = [0, 0], sizes = [8, 8], strides = [1, 1]} : vector<8x40xf32> to vector<8x8xf32>
    %cst_64 = arith.constant dense<0xFF800000> : vector<8xf32>
    %216 = vector.multi_reduction <maximumf>, %215, %cst_64 [1] : vector<8x8xf32> to vector<8xf32>
    %217 = vector.shape_cast %216 : vector<8xf32> to vector<8x1xf32>
    %218 = vector.broadcast %217 : vector<8x1xf32> to vector<8x8xf32>
    %219 = arith.subf %215, %218 : vector<8x8xf32>
    %220 = math.exp %219 : vector<8x8xf32>
    %cst_65 = arith.constant dense<0.000000e+00> : vector<8xf32>
    %221 = vector.multi_reduction <add>, %220, %cst_65 [1] : vector<8x8xf32> to vector<8xf32>
    %222 = vector.shape_cast %221 : vector<8xf32> to vector<8x1xf32>
    %223 = tpu.reciprocal %222 {approx = true} : vector<8x1xf32> -> vector<8x1xf32>
    %224 = vector.broadcast %223 : vector<8x1xf32> to vector<8x8xf32>
    %225 = arith.mulf %220, %224 : vector<8x8xf32>
    %226 = arith.truncf %225 : vector<8x8xf32> to vector<8x8xbf16>
    %227 = vector.extract_strided_slice %211 {offsets = [0, 0], sizes = [8, 8], strides = [1, 1]} : vector<40x8xbf16> to vector<8x8xbf16>
    %cst_66 = arith.constant dense<0.000000e+00> : vector<8x8xf32>
    %228 = tpu.matmul %226, %227, %cst_66 {dimension_numbers = #tpu.dot_dimension_numbers<[1], [0], [0], [1], [0, 0, 1, 1], [], []>} : vector<8x8xbf16>, vector<8x8xbf16>, vector<8x8xf32> -> vector<8x8xf32>
    %229 = arith.truncf %228 : vector<8x8xf32> to vector<8x8xbf16>
    %c16 = arith.constant 16 : index
    %c0_67 = arith.constant 0 : index
    %230 = vector.load %arg4[%c16, %c0_67] : memref<160x32xbf16, #tpu.memory_space<vmem>>, vector<8x32xbf16>
    %cst_68 = arith.constant dense<0.000000e+00> : vector<8x32xf32>
    %231 = tpu.matmul %229, %230, %cst_68 {dimension_numbers = #tpu.dot_dimension_numbers<[1], [0], [0], [1], [0, 0, 1, 1], [], []>} : vector<8x8xbf16>, vector<8x32xbf16>, vector<8x32xf32> -> vector<8x32xf32>
    %232 = arith.addf %205, %231 : vector<8x32xf32>
    %233 = vector.extract_strided_slice %214 {offsets = [0, 8], sizes = [8, 8], strides = [1, 1]} : vector<8x40xf32> to vector<8x8xf32>
    %cst_69 = arith.constant dense<0xFF800000> : vector<8xf32>
    %234 = vector.multi_reduction <maximumf>, %233, %cst_69 [1] : vector<8x8xf32> to vector<8xf32>
    %235 = vector.shape_cast %234 : vector<8xf32> to vector<8x1xf32>
    %236 = vector.broadcast %235 : vector<8x1xf32> to vector<8x8xf32>
    %237 = arith.subf %233, %236 : vector<8x8xf32>
    %238 = math.exp %237 : vector<8x8xf32>
    %cst_70 = arith.constant dense<0.000000e+00> : vector<8xf32>
    %239 = vector.multi_reduction <add>, %238, %cst_70 [1] : vector<8x8xf32> to vector<8xf32>
    %240 = vector.shape_cast %239 : vector<8xf32> to vector<8x1xf32>
    %241 = tpu.reciprocal %240 {approx = true} : vector<8x1xf32> -> vector<8x1xf32>
    %242 = vector.broadcast %241 : vector<8x1xf32> to vector<8x8xf32>
    %243 = arith.mulf %238, %242 : vector<8x8xf32>
    %244 = arith.truncf %243 : vector<8x8xf32> to vector<8x8xbf16>
    %245 = vector.extract_strided_slice %211 {offsets = [8, 0], sizes = [8, 8], strides = [1, 1]} : vector<40x8xbf16> to vector<8x8xbf16>
    %cst_71 = arith.constant dense<0.000000e+00> : vector<8x8xf32>
    %246 = tpu.matmul %244, %245, %cst_71 {dimension_numbers = #tpu.dot_dimension_numbers<[1], [0], [0], [1], [0, 0, 1, 1], [], []>} : vector<8x8xbf16>, vector<8x8xbf16>, vector<8x8xf32> -> vector<8x8xf32>
    %247 = arith.truncf %246 : vector<8x8xf32> to vector<8x8xbf16>
    %c48 = arith.constant 48 : index
    %c0_72 = arith.constant 0 : index
    %248 = vector.load %arg4[%c48, %c0_72] : memref<160x32xbf16, #tpu.memory_space<vmem>>, vector<8x32xbf16>
    %cst_73 = arith.constant dense<0.000000e+00> : vector<8x32xf32>
    %249 = tpu.matmul %247, %248, %cst_73 {dimension_numbers = #tpu.dot_dimension_numbers<[1], [0], [0], [1], [0, 0, 1, 1], [], []>} : vector<8x8xbf16>, vector<8x32xbf16>, vector<8x32xf32> -> vector<8x32xf32>
    %250 = arith.addf %232, %249 : vector<8x32xf32>
    %251 = vector.extract_strided_slice %214 {offsets = [0, 16], sizes = [8, 8], strides = [1, 1]} : vector<8x40xf32> to vector<8x8xf32>
    %cst_74 = arith.constant dense<0xFF800000> : vector<8xf32>
    %252 = vector.multi_reduction <maximumf>, %251, %cst_74 [1] : vector<8x8xf32> to vector<8xf32>
    %253 = vector.shape_cast %252 : vector<8xf32> to vector<8x1xf32>
    %254 = vector.broadcast %253 : vector<8x1xf32> to vector<8x8xf32>
    %255 = arith.subf %251, %254 : vector<8x8xf32>
    %256 = math.exp %255 : vector<8x8xf32>
    %cst_75 = arith.constant dense<0.000000e+00> : vector<8xf32>
    %257 = vector.multi_reduction <add>, %256, %cst_75 [1] : vector<8x8xf32> to vector<8xf32>
    %258 = vector.shape_cast %257 : vector<8xf32> to vector<8x1xf32>
    %259 = tpu.reciprocal %258 {approx = true} : vector<8x1xf32> -> vector<8x1xf32>
    %260 = vector.broadcast %259 : vector<8x1xf32> to vector<8x8xf32>
    %261 = arith.mulf %256, %260 : vector<8x8xf32>
    %262 = arith.truncf %261 : vector<8x8xf32> to vector<8x8xbf16>
    %263 = vector.extract_strided_slice %211 {offsets = [16, 0], sizes = [8, 8], strides = [1, 1]} : vector<40x8xbf16> to vector<8x8xbf16>
    %cst_76 = arith.constant dense<0.000000e+00> : vector<8x8xf32>
    %264 = tpu.matmul %262, %263, %cst_76 {dimension_numbers = #tpu.dot_dimension_numbers<[1], [0], [0], [1], [0, 0, 1, 1], [], []>} : vector<8x8xbf16>, vector<8x8xbf16>, vector<8x8xf32> -> vector<8x8xf32>
    %265 = arith.truncf %264 : vector<8x8xf32> to vector<8x8xbf16>
    %c80 = arith.constant 80 : index
    %c0_77 = arith.constant 0 : index
    %266 = vector.load %arg4[%c80, %c0_77] : memref<160x32xbf16, #tpu.memory_space<vmem>>, vector<8x32xbf16>
    %cst_78 = arith.constant dense<0.000000e+00> : vector<8x32xf32>
    %267 = tpu.matmul %265, %266, %cst_78 {dimension_numbers = #tpu.dot_dimension_numbers<[1], [0], [0], [1], [0, 0, 1, 1], [], []>} : vector<8x8xbf16>, vector<8x32xbf16>, vector<8x32xf32> -> vector<8x32xf32>
    %268 = arith.addf %250, %267 : vector<8x32xf32>
    %269 = vector.extract_strided_slice %214 {offsets = [0, 24], sizes = [8, 8], strides = [1, 1]} : vector<8x40xf32> to vector<8x8xf32>
    %cst_79 = arith.constant dense<0xFF800000> : vector<8xf32>
    %270 = vector.multi_reduction <maximumf>, %269, %cst_79 [1] : vector<8x8xf32> to vector<8xf32>
    %271 = vector.shape_cast %270 : vector<8xf32> to vector<8x1xf32>
    %272 = vector.broadcast %271 : vector<8x1xf32> to vector<8x8xf32>
    %273 = arith.subf %269, %272 : vector<8x8xf32>
    %274 = math.exp %273 : vector<8x8xf32>
    %cst_80 = arith.constant dense<0.000000e+00> : vector<8xf32>
    %275 = vector.multi_reduction <add>, %274, %cst_80 [1] : vector<8x8xf32> to vector<8xf32>
    %276 = vector.shape_cast %275 : vector<8xf32> to vector<8x1xf32>
    %277 = tpu.reciprocal %276 {approx = true} : vector<8x1xf32> -> vector<8x1xf32>
    %278 = vector.broadcast %277 : vector<8x1xf32> to vector<8x8xf32>
    %279 = arith.mulf %274, %278 : vector<8x8xf32>
    %280 = arith.truncf %279 : vector<8x8xf32> to vector<8x8xbf16>
    %281 = vector.extract_strided_slice %211 {offsets = [24, 0], sizes = [8, 8], strides = [1, 1]} : vector<40x8xbf16> to vector<8x8xbf16>
    %cst_81 = arith.constant dense<0.000000e+00> : vector<8x8xf32>
    %282 = tpu.matmul %280, %281, %cst_81 {dimension_numbers = #tpu.dot_dimension_numbers<[1], [0], [0], [1], [0, 0, 1, 1], [], []>} : vector<8x8xbf16>, vector<8x8xbf16>, vector<8x8xf32> -> vector<8x8xf32>
    %283 = arith.truncf %282 : vector<8x8xf32> to vector<8x8xbf16>
    %c112 = arith.constant 112 : index
    %c0_82 = arith.constant 0 : index
    %284 = vector.load %arg4[%c112, %c0_82] : memref<160x32xbf16, #tpu.memory_space<vmem>>, vector<8x32xbf16>
    %cst_83 = arith.constant dense<0.000000e+00> : vector<8x32xf32>
    %285 = tpu.matmul %283, %284, %cst_83 {dimension_numbers = #tpu.dot_dimension_numbers<[1], [0], [0], [1], [0, 0, 1, 1], [], []>} : vector<8x8xbf16>, vector<8x32xbf16>, vector<8x32xf32> -> vector<8x32xf32>
    %286 = arith.addf %268, %285 : vector<8x32xf32>
    %287 = vector.extract_strided_slice %214 {offsets = [0, 32], sizes = [8, 8], strides = [1, 1]} : vector<8x40xf32> to vector<8x8xf32>
    %cst_84 = arith.constant dense<0xFF800000> : vector<8xf32>
    %288 = vector.multi_reduction <maximumf>, %287, %cst_84 [1] : vector<8x8xf32> to vector<8xf32>
    %289 = vector.shape_cast %288 : vector<8xf32> to vector<8x1xf32>
    %290 = vector.broadcast %289 : vector<8x1xf32> to vector<8x8xf32>
    %291 = arith.subf %287, %290 : vector<8x8xf32>
    %292 = math.exp %291 : vector<8x8xf32>
    %cst_85 = arith.constant dense<0.000000e+00> : vector<8xf32>
    %293 = vector.multi_reduction <add>, %292, %cst_85 [1] : vector<8x8xf32> to vector<8xf32>
    %294 = vector.shape_cast %293 : vector<8xf32> to vector<8x1xf32>
    %295 = tpu.reciprocal %294 {approx = true} : vector<8x1xf32> -> vector<8x1xf32>
    %296 = vector.broadcast %295 : vector<8x1xf32> to vector<8x8xf32>
    %297 = arith.mulf %292, %296 : vector<8x8xf32>
    %298 = arith.truncf %297 : vector<8x8xf32> to vector<8x8xbf16>
    %299 = vector.extract_strided_slice %211 {offsets = [32, 0], sizes = [8, 8], strides = [1, 1]} : vector<40x8xbf16> to vector<8x8xbf16>
    %cst_86 = arith.constant dense<0.000000e+00> : vector<8x8xf32>
    %300 = tpu.matmul %298, %299, %cst_86 {dimension_numbers = #tpu.dot_dimension_numbers<[1], [0], [0], [1], [0, 0, 1, 1], [], []>} : vector<8x8xbf16>, vector<8x8xbf16>, vector<8x8xf32> -> vector<8x8xf32>
    %301 = arith.truncf %300 : vector<8x8xf32> to vector<8x8xbf16>
    %c144 = arith.constant 144 : index
    %c0_87 = arith.constant 0 : index
    %302 = vector.load %arg4[%c144, %c0_87] : memref<160x32xbf16, #tpu.memory_space<vmem>>, vector<8x32xbf16>
    %cst_88 = arith.constant dense<0.000000e+00> : vector<8x32xf32>
    %303 = tpu.matmul %301, %302, %cst_88 {dimension_numbers = #tpu.dot_dimension_numbers<[1], [0], [0], [1], [0, 0, 1, 1], [], []>} : vector<8x8xbf16>, vector<8x32xbf16>, vector<8x32xf32> -> vector<8x32xf32>
    %304 = arith.addf %286, %303 : vector<8x32xf32>
    %305 = vector.extract_strided_slice %6 {offsets = [32, 24], sizes = [8, 8], strides = [1, 1]} : vector<40x96xf32> to vector<8x8xf32>
    %306 = arith.truncf %305 : vector<8x8xf32> to vector<8x8xbf16>
    %307 = vector.extract_strided_slice %6 {offsets = [0, 56], sizes = [40, 8], strides = [1, 1]} : vector<40x96xf32> to vector<40x8xf32>
    %308 = arith.truncf %307 : vector<40x8xf32> to vector<40x8xbf16>
    %309 = vector.extract_strided_slice %6 {offsets = [0, 88], sizes = [40, 8], strides = [1, 1]} : vector<40x96xf32> to vector<40x8xf32>
    %310 = arith.truncf %309 : vector<40x8xf32> to vector<40x8xbf16>
    "tpu.trace_start"() <{level = 10 : i32, message = "qd,kd->qk"}> : () -> ()
    %cst_89 = arith.constant dense<0.000000e+00> : vector<8x40xf32>
    %311 = tpu.matmul %306, %308, %cst_89 {dimension_numbers = #tpu.dot_dimension_numbers<[1], [1], [0], [0], [0, 0, 1, 0], [], []>} : vector<8x8xbf16>, vector<40x8xbf16>, vector<8x40xf32> -> vector<8x40xf32>
    "tpu.trace_stop"() : () -> ()
    %cst_90 = arith.constant 0.353553385 : f32
    %312 = vector.broadcast %cst_90 : f32 to vector<8x40xf32>
    %313 = arith.mulf %311, %312 : vector<8x40xf32>
    %314 = vector.extract_strided_slice %313 {offsets = [0, 0], sizes = [8, 8], strides = [1, 1]} : vector<8x40xf32> to vector<8x8xf32>
    %cst_91 = arith.constant dense<0xFF800000> : vector<8xf32>
    %315 = vector.multi_reduction <maximumf>, %314, %cst_91 [1] : vector<8x8xf32> to vector<8xf32>
    %316 = vector.shape_cast %315 : vector<8xf32> to vector<8x1xf32>
    %317 = vector.broadcast %316 : vector<8x1xf32> to vector<8x8xf32>
    %318 = arith.subf %314, %317 : vector<8x8xf32>
    %319 = math.exp %318 : vector<8x8xf32>
    %cst_92 = arith.constant dense<0.000000e+00> : vector<8xf32>
    %320 = vector.multi_reduction <add>, %319, %cst_92 [1] : vector<8x8xf32> to vector<8xf32>
    %321 = vector.shape_cast %320 : vector<8xf32> to vector<8x1xf32>
    %322 = tpu.reciprocal %321 {approx = true} : vector<8x1xf32> -> vector<8x1xf32>
    %323 = vector.broadcast %322 : vector<8x1xf32> to vector<8x8xf32>
    %324 = arith.mulf %319, %323 : vector<8x8xf32>
    %325 = arith.truncf %324 : vector<8x8xf32> to vector<8x8xbf16>
    %326 = vector.extract_strided_slice %310 {offsets = [0, 0], sizes = [8, 8], strides = [1, 1]} : vector<40x8xbf16> to vector<8x8xbf16>
    %cst_93 = arith.constant dense<0.000000e+00> : vector<8x8xf32>
    %327 = tpu.matmul %325, %326, %cst_93 {dimension_numbers = #tpu.dot_dimension_numbers<[1], [0], [0], [1], [0, 0, 1, 1], [], []>} : vector<8x8xbf16>, vector<8x8xbf16>, vector<8x8xf32> -> vector<8x8xf32>
    %328 = arith.truncf %327 : vector<8x8xf32> to vector<8x8xbf16>
    %c24 = arith.constant 24 : index
    %c0_94 = arith.constant 0 : index
    %329 = vector.load %arg4[%c24, %c0_94] : memref<160x32xbf16, #tpu.memory_space<vmem>>, vector<8x32xbf16>
    %cst_95 = arith.constant dense<0.000000e+00> : vector<8x32xf32>
    %330 = tpu.matmul %328, %329, %cst_95 {dimension_numbers = #tpu.dot_dimension_numbers<[1], [0], [0], [1], [0, 0, 1, 1], [], []>} : vector<8x8xbf16>, vector<8x32xbf16>, vector<8x32xf32> -> vector<8x32xf32>
    %331 = arith.addf %304, %330 : vector<8x32xf32>
    %332 = vector.extract_strided_slice %313 {offsets = [0, 8], sizes = [8, 8], strides = [1, 1]} : vector<8x40xf32> to vector<8x8xf32>
    %cst_96 = arith.constant dense<0xFF800000> : vector<8xf32>
    %333 = vector.multi_reduction <maximumf>, %332, %cst_96 [1] : vector<8x8xf32> to vector<8xf32>
    %334 = vector.shape_cast %333 : vector<8xf32> to vector<8x1xf32>
    %335 = vector.broadcast %334 : vector<8x1xf32> to vector<8x8xf32>
    %336 = arith.subf %332, %335 : vector<8x8xf32>
    %337 = math.exp %336 : vector<8x8xf32>
    %cst_97 = arith.constant dense<0.000000e+00> : vector<8xf32>
    %338 = vector.multi_reduction <add>, %337, %cst_97 [1] : vector<8x8xf32> to vector<8xf32>
    %339 = vector.shape_cast %338 : vector<8xf32> to vector<8x1xf32>
    %340 = tpu.reciprocal %339 {approx = true} : vector<8x1xf32> -> vector<8x1xf32>
    %341 = vector.broadcast %340 : vector<8x1xf32> to vector<8x8xf32>
    %342 = arith.mulf %337, %341 : vector<8x8xf32>
    %343 = arith.truncf %342 : vector<8x8xf32> to vector<8x8xbf16>
    %344 = vector.extract_strided_slice %310 {offsets = [8, 0], sizes = [8, 8], strides = [1, 1]} : vector<40x8xbf16> to vector<8x8xbf16>
    %cst_98 = arith.constant dense<0.000000e+00> : vector<8x8xf32>
    %345 = tpu.matmul %343, %344, %cst_98 {dimension_numbers = #tpu.dot_dimension_numbers<[1], [0], [0], [1], [0, 0, 1, 1], [], []>} : vector<8x8xbf16>, vector<8x8xbf16>, vector<8x8xf32> -> vector<8x8xf32>
    %346 = arith.truncf %345 : vector<8x8xf32> to vector<8x8xbf16>
    %c56 = arith.constant 56 : index
    %c0_99 = arith.constant 0 : index
    %347 = vector.load %arg4[%c56, %c0_99] : memref<160x32xbf16, #tpu.memory_space<vmem>>, vector<8x32xbf16>
    %cst_100 = arith.constant dense<0.000000e+00> : vector<8x32xf32>
    %348 = tpu.matmul %346, %347, %cst_100 {dimension_numbers = #tpu.dot_dimension_numbers<[1], [0], [0], [1], [0, 0, 1, 1], [], []>} : vector<8x8xbf16>, vector<8x32xbf16>, vector<8x32xf32> -> vector<8x32xf32>
    %349 = arith.addf %331, %348 : vector<8x32xf32>
    %350 = vector.extract_strided_slice %313 {offsets = [0, 16], sizes = [8, 8], strides = [1, 1]} : vector<8x40xf32> to vector<8x8xf32>
    %cst_101 = arith.constant dense<0xFF800000> : vector<8xf32>
    %351 = vector.multi_reduction <maximumf>, %350, %cst_101 [1] : vector<8x8xf32> to vector<8xf32>
    %352 = vector.shape_cast %351 : vector<8xf32> to vector<8x1xf32>
    %353 = vector.broadcast %352 : vector<8x1xf32> to vector<8x8xf32>
    %354 = arith.subf %350, %353 : vector<8x8xf32>
    %355 = math.exp %354 : vector<8x8xf32>
    %cst_102 = arith.constant dense<0.000000e+00> : vector<8xf32>
    %356 = vector.multi_reduction <add>, %355, %cst_102 [1] : vector<8x8xf32> to vector<8xf32>
    %357 = vector.shape_cast %356 : vector<8xf32> to vector<8x1xf32>
    %358 = tpu.reciprocal %357 {approx = true} : vector<8x1xf32> -> vector<8x1xf32>
    %359 = vector.broadcast %358 : vector<8x1xf32> to vector<8x8xf32>
    %360 = arith.mulf %355, %359 : vector<8x8xf32>
    %361 = arith.truncf %360 : vector<8x8xf32> to vector<8x8xbf16>
    %362 = vector.extract_strided_slice %310 {offsets = [16, 0], sizes = [8, 8], strides = [1, 1]} : vector<40x8xbf16> to vector<8x8xbf16>
    %cst_103 = arith.constant dense<0.000000e+00> : vector<8x8xf32>
    %363 = tpu.matmul %361, %362, %cst_103 {dimension_numbers = #tpu.dot_dimension_numbers<[1], [0], [0], [1], [0, 0, 1, 1], [], []>} : vector<8x8xbf16>, vector<8x8xbf16>, vector<8x8xf32> -> vector<8x8xf32>
    %364 = arith.truncf %363 : vector<8x8xf32> to vector<8x8xbf16>
    %c88 = arith.constant 88 : index
    %c0_104 = arith.constant 0 : index
    %365 = vector.load %arg4[%c88, %c0_104] : memref<160x32xbf16, #tpu.memory_space<vmem>>, vector<8x32xbf16>
    %cst_105 = arith.constant dense<0.000000e+00> : vector<8x32xf32>
    %366 = tpu.matmul %364, %365, %cst_105 {dimension_numbers = #tpu.dot_dimension_numbers<[1], [0], [0], [1], [0, 0, 1, 1], [], []>} : vector<8x8xbf16>, vector<8x32xbf16>, vector<8x32xf32> -> vector<8x32xf32>
    %367 = arith.addf %349, %366 : vector<8x32xf32>
    %368 = vector.extract_strided_slice %313 {offsets = [0, 24], sizes = [8, 8], strides = [1, 1]} : vector<8x40xf32> to vector<8x8xf32>
    %cst_106 = arith.constant dense<0xFF800000> : vector<8xf32>
    %369 = vector.multi_reduction <maximumf>, %368, %cst_106 [1] : vector<8x8xf32> to vector<8xf32>
    %370 = vector.shape_cast %369 : vector<8xf32> to vector<8x1xf32>
    %371 = vector.broadcast %370 : vector<8x1xf32> to vector<8x8xf32>
    %372 = arith.subf %368, %371 : vector<8x8xf32>
    %373 = math.exp %372 : vector<8x8xf32>
    %cst_107 = arith.constant dense<0.000000e+00> : vector<8xf32>
    %374 = vector.multi_reduction <add>, %373, %cst_107 [1] : vector<8x8xf32> to vector<8xf32>
    %375 = vector.shape_cast %374 : vector<8xf32> to vector<8x1xf32>
    %376 = tpu.reciprocal %375 {approx = true} : vector<8x1xf32> -> vector<8x1xf32>
    %377 = vector.broadcast %376 : vector<8x1xf32> to vector<8x8xf32>
    %378 = arith.mulf %373, %377 : vector<8x8xf32>
    %379 = arith.truncf %378 : vector<8x8xf32> to vector<8x8xbf16>
    %380 = vector.extract_strided_slice %310 {offsets = [24, 0], sizes = [8, 8], strides = [1, 1]} : vector<40x8xbf16> to vector<8x8xbf16>
    %cst_108 = arith.constant dense<0.000000e+00> : vector<8x8xf32>
    %381 = tpu.matmul %379, %380, %cst_108 {dimension_numbers = #tpu.dot_dimension_numbers<[1], [0], [0], [1], [0, 0, 1, 1], [], []>} : vector<8x8xbf16>, vector<8x8xbf16>, vector<8x8xf32> -> vector<8x8xf32>
    %382 = arith.truncf %381 : vector<8x8xf32> to vector<8x8xbf16>
    %c120 = arith.constant 120 : index
    %c0_109 = arith.constant 0 : index
    %383 = vector.load %arg4[%c120, %c0_109] : memref<160x32xbf16, #tpu.memory_space<vmem>>, vector<8x32xbf16>
    %cst_110 = arith.constant dense<0.000000e+00> : vector<8x32xf32>
    %384 = tpu.matmul %382, %383, %cst_110 {dimension_numbers = #tpu.dot_dimension_numbers<[1], [0], [0], [1], [0, 0, 1, 1], [], []>} : vector<8x8xbf16>, vector<8x32xbf16>, vector<8x32xf32> -> vector<8x32xf32>
    %385 = arith.addf %367, %384 : vector<8x32xf32>
    %386 = vector.extract_strided_slice %313 {offsets = [0, 32], sizes = [8, 8], strides = [1, 1]} : vector<8x40xf32> to vector<8x8xf32>
    %cst_111 = arith.constant dense<0xFF800000> : vector<8xf32>
    %387 = vector.multi_reduction <maximumf>, %386, %cst_111 [1] : vector<8x8xf32> to vector<8xf32>
    %388 = vector.shape_cast %387 : vector<8xf32> to vector<8x1xf32>
    %389 = vector.broadcast %388 : vector<8x1xf32> to vector<8x8xf32>
    %390 = arith.subf %386, %389 : vector<8x8xf32>
    %391 = math.exp %390 : vector<8x8xf32>
    %cst_112 = arith.constant dense<0.000000e+00> : vector<8xf32>
    %392 = vector.multi_reduction <add>, %391, %cst_112 [1] : vector<8x8xf32> to vector<8xf32>
    %393 = vector.shape_cast %392 : vector<8xf32> to vector<8x1xf32>
    %394 = tpu.reciprocal %393 {approx = true} : vector<8x1xf32> -> vector<8x1xf32>
    %395 = vector.broadcast %394 : vector<8x1xf32> to vector<8x8xf32>
    %396 = arith.mulf %391, %395 : vector<8x8xf32>
    %397 = arith.truncf %396 : vector<8x8xf32> to vector<8x8xbf16>
    %398 = vector.extract_strided_slice %310 {offsets = [32, 0], sizes = [8, 8], strides = [1, 1]} : vector<40x8xbf16> to vector<8x8xbf16>
    %cst_113 = arith.constant dense<0.000000e+00> : vector<8x8xf32>
    %399 = tpu.matmul %397, %398, %cst_113 {dimension_numbers = #tpu.dot_dimension_numbers<[1], [0], [0], [1], [0, 0, 1, 1], [], []>} : vector<8x8xbf16>, vector<8x8xbf16>, vector<8x8xf32> -> vector<8x8xf32>
    %400 = arith.truncf %399 : vector<8x8xf32> to vector<8x8xbf16>
    %c152 = arith.constant 152 : index
    %c0_114 = arith.constant 0 : index
    %401 = vector.load %arg4[%c152, %c0_114] : memref<160x32xbf16, #tpu.memory_space<vmem>>, vector<8x32xbf16>
    %cst_115 = arith.constant dense<0.000000e+00> : vector<8x32xf32>
    %402 = tpu.matmul %400, %401, %cst_115 {dimension_numbers = #tpu.dot_dimension_numbers<[1], [0], [0], [1], [0, 0, 1, 1], [], []>} : vector<8x8xbf16>, vector<8x32xbf16>, vector<8x32xf32> -> vector<8x32xf32>
    %403 = arith.addf %385, %402 : vector<8x32xf32>
    %c0_116 = arith.constant 0 : index
    %c0_117 = arith.constant 0 : index
    %404 = vector.load %arg5[%c0_116, %c0_117] : memref<1x32xf32, #tpu.memory_space<vmem>>, vector<1x32xf32>
    %405 = vector.broadcast %404 : vector<1x32xf32> to vector<8x32xf32>
    %406 = arith.addf %403, %405 : vector<8x32xf32>
    %c0_118 = arith.constant 0 : index
    %c0_119 = arith.constant 0 : index
    %c0_120 = arith.constant 0 : index
    %407 = vector.load %arg6[%c0_118, %c0_119, %c0_120] : memref<1x8x32xf32, #tpu.memory_space<vmem>>, vector<1x8x32xf32>
    %408 = vector.shape_cast %407 : vector<1x8x32xf32> to vector<8x32xf32>
    %409 = vector.shape_cast %406 : vector<8x32xf32> to vector<1x8x32xf32>
    tpu.vector_store %arg6[%c0_118, %c0_119, %c0_120], %409 {strides = array<i32>} : memref<1x8x32xf32, #tpu.memory_space<vmem>>, vector<1x8x32xf32>,
    return
  }
  func.func @transform_0(%arg0: i32) -> (i32, i32, i32) {
    %c0_i32 = arith.constant 0 : i32
    %c0_i32_0 = arith.constant 0 : i32
    %c0_i32_1 = arith.constant 0 : i32
    return %arg0, %c0_i32, %c0_i32_0 : i32, i32, i32
  }
  func.func @transform_1(%arg0: i32) -> (i32, i32) {
    %c0_i32 = arith.constant 0 : i32
    %c0_i32_0 = arith.constant 0 : i32
    %c0_i32_1 = arith.constant 0 : i32
    return %c0_i32, %c0_i32_0 : i32, i32
  }
  func.func @transform_2(%arg0: i32) -> (i32, i32) {
    %c0_i32 = arith.constant 0 : i32
    %c0_i32_0 = arith.constant 0 : i32
    %c0_i32_1 = arith.constant 0 : i32
    return %c0_i32, %c0_i32_0 : i32, i32
  }
  func.func @transform_3(%arg0: i32) -> (i32, i32) {
    %c0_i32 = arith.constant 0 : i32
    %c0_i32_0 = arith.constant 0 : i32
    %c0_i32_1 = arith.constant 0 : i32
    return %c0_i32, %c0_i32_0 : i32, i32
  }
  func.func @transform_4(%arg0: i32) -> (i32, i32) {
    %c0_i32 = arith.constant 0 : i32
    %c0_i32_0 = arith.constant 0 : i32
    %c0_i32_1 = arith.constant 0 : i32
    return %c0_i32, %c0_i32_0 : i32, i32
  }
  func.func @transform_5(%arg0: i32) -> (i32, i32, i32) {
    %c0_i32 = arith.constant 0 : i32
    %c0_i32_0 = arith.constant 0 : i32
    %c0_i32_1 = arith.constant 0 : i32
    return %arg0, %c0_i32, %c0_i32_0 : i32, i32, i32
  }
}

</mosaic_0001>

<bundles_post_ra>
// kernel: tpu_custom_call.1
= control target key start
LH: loop header
LB: loop body
LE: loop exit
PB: predicated region body
PF: predicated region fallthrough
CT: control target
= control target key end

     0   :  { %10 = vsyncpa [#allocation3], 0  ;;  %s4291_s0 = inlined_call_operand.vmem [shape: bf16[2,40,32], index: 0, kind: input, shape index: {}]   ;;  %s4292_s1 = inlined_call_operand.vmem [shape: bf16[32,96], index: 1, kind: input, shape index: {}]   ;;  %s4293_s2 = inlined_call_operand.vmem [shape: f32[1,96], index: 2, kind: input, shape index: {}]   ;;  %s4294_s3 = inlined_call_operand.vmem [shape: bf16[160,32], index: 3, kind: input, shape index: {}]   ;;  %s4295_s4 = inlined_call_operand.vmem [shape: f32[1,32], index: 4, kind: input, shape index: {}]   ;;  %s4296_s5 = inlined_call_operand.hbm [shape: f32[2,8,32], index: 5, kind: output, shape index: {}]  }
   0x1   :  { %12 = vsyncpa [#allocation3 + $0x1], 0  ;;  %s3666_s18 = smov 0   ;;  %s3668_s19 = smov 0  }
   0x2   :  { %s3670_s20 = smov 0   ;;  %s3672_s21 = smov 0  }
   0x3 LB: > { %s3687_s22 = sadd.s32 4294967295, %s3620_s21   ;;  %s2959_s23 = sadd.s32 4294967294, %s3620_s21   ;;  %s3620_s21 = sphi %s3672_s21, %s4302_s21   ;;  %s3616_s20 = sphi %s3670_s20, %s4301_s20   ;;  %s3612_s19 = sphi %s3668_s19, %s4300_s19   ;;  %s3608_s18 = sphi %s3666_s18, %s4299_s18  }
   0x4   : > { %s3691_s24 = sadd.s32 1, %s3620_s21   ;;  %s135_s25 = sadd.s32 1, %s3616_s20 }
   0x5   : > { %s132_s26 = ssub.s32 %s3620_s21, %s3691_s24  ;;  %p145_p0 = scmp.ne.s32.totalorder %s3616_s20, %s3612_s19 }
   0x6   : > { %p133_p1 = scmp.eq.s32.totalorder %s132_s26, 0  ;;  %p146_p2 = scmp.eq.s32.totalorder %s3687_s22, 1 }
   0x7   : > { %p151_p3 = scmp.ne.s32.totalorder %s3612_s19, %s3608_s18  ;;  %p152_p4 = scmp.eq.s32.totalorder %s2959_s23, 1 }
   0x8   : > { %s3702_s27 = scalar_select %p133_p1, %s3616_s20, %s135_s25  }
   0x9   : > { %p3704_p5 = por %p146_p2, %p145_p0  ;;  %p3708_p6 = por %p152_p4, %p151_p3 }
   0xa   : > { %p2962_p7 = scmp.ge.s32.totalorder %s3620_s21, 1  ;;  %p190_p8 = scmp.lt.s32.totalorder %s3620_s21, 3 }
   0xc   : > { %p191_p9 = pnand %p2962_p7, %p190_p8 }
   0xd   : > { %v3473_v0 = vld [vmem:[%s4292_s1] sm:$0xff] (!%p191_p9)   ;;  %v3622_v1 = vmov (!%p191_p9), 0.0   ;;  %v3474_v2 = vld [vmem:[%s4292_s1 + $0x8] sm:$0xff] (!%p191_p9)   ;;  %vm3623_vm0 = vmmov (!%p191_p9), 0   ;;  %p218_p10 = scmp.lt.s32.totalorder (!%p191_p9), %s3687_s22, 1  ;;  %vm265_vm1 = vcmask (!%p191_p9), 261120  }
   0xe   : > { %194 = sbr.rel (%p191_p9) target bundleno = 4677 (0x1245), region = 40  ;;  %3124 = vmatprep.subr.bf16.mxu0 (!%p191_p9), %v3622_v1  ;;  %3140 = vmatprep.subr.bf16.mxu1 (!%p191_p9), %v3622_v1  ;;  %v2965_v6 = vld [vmem:[%s4293_s2] ss:$0 sm:$0xff] (!%p191_p9)  ;;  %s3624_s16 = smov (!%p191_p9), 96   ;;  %vm343_vm2 = vcmask (!%p191_p9), 64512   ;;  %vm460_vm3 = vcmask (!%p191_p9), 130112  }
   0xf   : > { %3125 = vmatpush3.bf16.msra.mxu0 (!%p191_p9), %v3473_v0  ;;  %3128 = vmatprep.mubr.msk.bf16.mxu0 (!%p191_p9), %vm3623_vm0, %v3622_v1  ;;  %vm623_vm4 = vcmask (!%p191_p9), 195712   ;;  %vm740_vm5 = vcmask (!%p191_p9), 261312   ;;  %s3625_s17 = smov (!%p191_p9), 120   ;;  %s3626_s23 = smov (!%p191_p9), 64   ;;  %vm858_vm6 = vcmask (!%p191_p9), 326912   ;;  %vm414_vm7 = vcmask (!%p191_p9), 1043456  }
  0x10   : > { %3126 = vmatprep.subr.bf16.mxu0 (!%p191_p9), %v3622_v1  ;;  %3146 = vmatprep.mubr.msk.bf16.mxu1 (!%p191_p9), %vm3623_vm0, %v3622_v1  ;;  %s3627_s25 = smov (!%p191_p9), 112   ;;  %s3628_s26 = smov (!%p191_p9), 104  }
  0x11   : > { %s3629_s30 = smov (!%p191_p9), 88   ;;  %s3631_s7 = smov (!%p191_p9), 80  }
  0x12   : > { %s215_s11 = sand.u32 (!%p191_p9), 1, %s3612_s19   ;;  %s3020_s15 = sshll.u32 (!%p191_p9), %s3687_s22, 7 }
  0x13   : > { %3127 = vmatpush3.bf16.msra.mxu0 (!%p191_p9), %v3474_v2  ;;  %s2963_s12 = sshll.u32 (!%p191_p9), %s215_s11, 3 }
  0x14   : > { %3150 = vmatprep.subr.bf16.mxu0 (!%p191_p9), %v3622_v1 }
  0x15   : > { %s219_s9 = scalar_select %p218_p10, %s3687_s22, 1 }
  0x16   : > { %s2887_s22 = scalar_lea.sflag [#allocation3], %s215_s11 }
  0x17   : > { %s3420_s10 = smul.u32 20, %s219_s9 }
  0x19   : > { %s222_s13 = scalar_lea.vmem %s4291_s0, %s3420_s10 }
  0x1a   : > { %v3475_v3 = vld [vmem:[%s222_s13] sm:$0xff]   ;;  %v3476_v4 = vld [vmem:[%s222_s13 + $0x8] sm:$0xff]   ;;  %v3477_v5 = vld [vmem:[%s222_s13 + $0x10] ss:$0 sps:$4 sm:$0xff]  }
  0x1b   : > { %3129 = vmatmul.mubr.msk.bf16.vlgmr.msra.gmra.mrb[0].mxu0 %vm265_vm1, %v3475_v3 }
  0x1c   : > { %3132 = vmatprep.mubr.msk.bf16.mxu0 %vm3623_vm0, %v3622_v1 }
  0x23   : > { %3133 = vmatmul.mubr.msk.bf16.gmra.mrb[4].mxu0 %vm265_vm1, %v3476_v4 }
  0x24   : > { %3136 = vmatprep.mubr.msk.bf16.mxu0 %vm3623_vm0, %v3622_v1 }
  0x2b   : > { %3137 = vmatmul.mubr.msk.bf16.gmra.mrb[8].mxu0 %vm265_vm1, %v3477_v5 }
  0x2c   : > { %3152 = vmatprep.mubr.msk.bf16.mxu0 %vm3623_vm0, %v3622_v1 }
  0xee   : > { %v309_v7 = vpop.f32.mrb[0].mxu0 }
  0xef   : > { %v3130_v8 = vpop.f32.mrb[1].mxu0  ;;  %v310_v10 = vadd.f32 %v2965_v6, %v309_v7 }
  0xf0   : > { %v312_v9 = vpop.f32.mrb[2].mxu0 }
  0xf1   : > { %v313_v11 = vadd.f32 %v2965_v6, %v312_v9  ;;  %v3131_v12 = vpop.f32.mrb[3].mxu0 }
  0xf3   : > { %v3745_v13 = vpack.c.bf16 %v313_v11, %v310_v10 }
  0xf5   : > { %337 = vrot.lane.b32.xlu0 %v3745_v13, %s3624_s16  ;;  %v3779_v47 = vrot.slane %v3745_v13, 4 }
  0xf6   : > { %v317_v14 = vpop.f32.mrb[4].mxu0 }
  0xf7   : > { %v3134_v15 = vpop.f32.mrb[5].mxu0  ;;  %v318_v17 = vadd.f32 %v2965_v6, %v317_v14 }
  0xf8   : > { %v320_v16 = vpop.f32.mrb[6].mxu0 }
  0xf9   : > { %v321_v18 = vadd.f32 %v2965_v6, %v320_v16  ;;  %v3135_v19 = vpop.f32.mrb[7].mxu0 }
  0xfb   : > { %v3749_v20 = vpack.c.bf16 %v321_v18, %v318_v17 }
  0xfd   : > { %339 = vrot.lane.b32.xlu0 %v3749_v20, %s3624_s16 }
  0xfe   : > { %v325_v21 = vpop.f32.mrb[8].mxu0 }
  0xff   : > { %v326_v22 = vadd.f32 %v2965_v6, %v325_v21  ;;  %v3138_v23 = vpop.f32.mrb[9].mxu0 }
 0x100   : > { %v328_v24 = vpop.f32.mrb[10].mxu0 }
 0x101   : > { %v3753_v25 = vpack.c.bf16 %v326_v22, %v326_v22  ;;  %v3139_v26 = vpop.f32.mrb[11].mxu0 }
 0x102   : > { %v3812_v26 = vrot.slane %v3749_v20, 4 }
 0x103   : > { %341 = vrot.lane.b32.xlu1 %v3753_v25, %s3624_s16 }
 0x167   : > { %v338_v27 = vpop.permute.xlu0 %337 }
 0x168   : > { %v348_v28 = vsel %vm343_vm2, %v338_v27, 0 }
 0x169   : > { %3141 = vmatpush3.bf16.xpose.msra.mxu1 %v348_v28 }
 0x16a   : > { %3142 = vmatprep.subr.bf16.mxu1 %v3622_v1 }
 0x16f   : > { %v340_v29 = vpop.permute.xlu0 %339 }
 0x170   : > { %v351_v30 = vsel %vm343_vm2, %v340_v29, 0 }
 0x171   : > { %3143 = vmatpush3.bf16.xpose.msra.mxu1 %v351_v30 }
 0x172   : > { %3144 = vmatprep.subr.bf16.mxu1 %v3622_v1 }
 0x175   : > { %v342_v31 = vpop.permute.xlu1 %341 }
 0x176   : > { %v354_v32 = vsel %vm343_vm2, %v342_v31, 0 }
 0x179   : > { %3145 = vmatpush3.bf16.xpose.msra.mxu1 %v354_v32 }
 0x17a   : > { %3156 = vmatprep.subr.bf16.mxu1 %v3622_v1 }
 0x180   : > { %3147 = vmatmul.mubr.msk.bf16.vlgmr.msra.gmra.mrb[0].mxu1 %vm343_vm2, %v3753_v25 }
 0x181   : > { %3158 = vmatprep.mubr.msk.bf16.mxu1 %vm3623_vm0, %v3622_v1 }
 0x253   : > { %v390_v33 = vpop.f32.mrb[0].mxu1 }
 0x254   : > { %v3767_v34 = vmul.f32 0.35355338, %v390_v33  ;;  %v3148_v35 = vpop.f32.mrb[1].mxu1 }
 0x255   : > { %v393_v36 = vpop.f32.mrb[2].mxu1 }
 0x256   : > { %v3149_v37 = vpop.f32.mrb[3].mxu1  ;;  %v461_v38 = vsel %vm460_vm3, %v3767_v34, -inf  ;;  %v624_v39 = vsel %vm623_vm4, %v3767_v34, -inf  ;;  %v741_v40 = vsel %vm740_vm5, %v3767_v34, -inf  ;;  %v859_v48 = vsel %vm858_vm6, %v3767_v34, -inf }
 0x257   : > { %462 = vmax.xlane.f32.xlu1 %v461_v38  ;;  %v397_v3 = vsel %vm343_vm2, %v3767_v34, -inf }
 0x25b   : > { %625 = vmax.xlane.f32.xlu1 %v624_v39 }
 0x25f   : > { %742 = vmax.xlane.f32.xlu1 %v741_v40 }
 0x2e4   : > { %v463_v41 = vpop.xlane.xlu1 %462 }
 0x2e5   : > { %v464_v42 = vsub.f32 %v3767_v34, %v463_v41  ;;  %v530_v41 = vld [vmem:[%s4294_s3 + $0x10] sm:$0xf] }
 0x2e7   : > { %v465_v43 = vmul.f32 1.442695, %v464_v42 }
 0x2e8   : > { %v626_v49 = vpop.xlane.xlu1 %625 }
 0x2e9   : > { %3478 = vpow2.f32 %v465_v43  ;;  %v627_v51 = vsub.f32 %v3767_v34, %v626_v49 }
 0x2eb   : > { %v628_v54 = vmul.f32 1.442695, %v627_v51 }
 0x2ec   : > { %v743_v52 = vpop.xlane.xlu1 %742 }
 0x2ed   : > { %v744_v55 = vsub.f32 %v3767_v34, %v743_v52 }
 0x2ef   : > { %v745_v57 = vmul.f32 1.442695, %v744_v55 }
 0x2f3   : > { %v3479_v44 = vpop.eup %3478 }
 0x2f4   : > { %468 = vrot.lane.b32.xlu0 %v3479_v44, %s3625_s17 }
 0x366   : > { %v469_v45 = vpop.permute.xlu0 %468 }
 0x367   : > { %v471_v46 = vsel %vm343_vm2, %v469_v45, 0.0 }
 0x368   : > { %472 = vadd.xlane.f32.xlu0 %v471_v46 }
 0x37e   : > { %481 = vrot.lane.b32.xlu0 %v3779_v47, %s3626_s23 }
 0x39d   : > { %860 = vmax.xlane.f32.xlu0 %v859_v48 }
 0x3f5   : > { %v473_v50 = vpop.xlane.xlu0 %472 }
 0x3f6   : > { %3480 = vrcp.f32 %v473_v50 }
 0x3f7   : > { %3482 = vpow2.f32 %v628_v54 }
 0x3f8   : > { %3484 = vpow2.f32 %v745_v57 }
 0x3f9   : > { %v482_v53 = vpop.permute.xlu0 %481 }
 0x3fa   : > { %v487_v56 = vsel %vm414_vm7, %v482_v53, 0 }
 0x3fb   : > { %3157 = vmatpush3.bf16.msra.mxu1 %v487_v56 }
 0x3fc   : > { %3168 = vmatprep.subr.bf16.mxu1 %v3622_v1 }
 0x400   : > { %v3481_v58 = vpop.eup %3480 }
 0x401   : > { %v475_v59 = vmul.f32 %v3481_v58, %v3479_v44  ;;  %v3483_v61 = vpop.eup %3482  ;;  %v535_v44 = vsel %vm414_vm7, %v530_v41, 0  ;;  %v459_v58 = vld [vmem:[%s4294_s3] sm:$0xf] }
 0x402   : > { %v3485_v62 = vpop.eup %3484 }
 0x403   : > { %v476_v60 = vpack.c.bf16 %v475_v59, %v475_v59  ;;  %v581_v59 = vsel %vm414_vm7, %v459_v58, 0 }
 0x405   : > { %478 = vrot.lane.b32.xlu1 %v476_v60, %s3625_s17 }
 0x409   : > { %631 = vrot.lane.b32.xlu1 %v3483_v61, %s3627_s25 }
 0x40d   : > { %748 = vrot.lane.b32.xlu1 %v3485_v62, %s3628_s26 }
 0x42a   : > { %v861_v63 = vpop.xlane.xlu0 %860 }
 0x42b   : > { %v862_v0 = vsub.f32 %v3767_v34, %v861_v63 }
 0x42d   : > { %v863_v2 = vmul.f32 1.442695, %v862_v0 }
 0x42f   : > { %3486 = vpow2.f32 %v863_v2  ;;  %v692_v2 = vld [vmem:[%s4294_s3 + $0x20] sm:$0xf] }
 0x431   : > { %398 = vmax.xlane.f32.xlu1 %v397_v3 }
 0x439   : > { %v3487_v4 = vpop.eup %3486 }
 0x43a   : > { %866 = vrot.lane.b32.xlu0 %v3487_v4, %s3624_s16 }
 0x477   : > { %v479_v5 = vpop.permute.xlu1 %478 }
 0x478   : > { %3159 = vmatmul.mubr.msk.bf16.vlgmr.msra.gmra.mrb[4].mxu1 %vm343_vm2, %v479_v5 }
 0x479   : > { %3170 = vmatprep.mubr.msk.bf16.mxu1 %vm3623_vm0, %v3622_v1  ;;  %3169 = vmatpush3.bf16.msra.mxu1 %v581_v59 }
 0x47a   : > { %3180 = vmatprep.subr.bf16.mxu1 %v3622_v1 }
 0x47b   : > { %v632_v6 = vpop.permute.xlu1 %631 }
 0x47c   : > { %v634_v7 = vsel %vm343_vm2, %v632_v6, 0.0  ;;  %v697_v6 = vsel %vm414_vm7, %v692_v2, 0 }
 0x47d   : > { %635 = vadd.xlane.f32.xlu1 %v634_v7 }
 0x47f   : > { %v749_v8 = vpop.permute.xlu1 %748 }
 0x480   : > { %v751_v9 = vsel %vm343_vm2, %v749_v8, 0.0 }
 0x481   : > { %752 = vadd.xlane.f32.xlu1 %v751_v9 }
 0x4ac   : > { %v867_v10 = vpop.permute.xlu0 %866 }
 0x4ad   : > { %v869_v11 = vsel %vm343_vm2, %v867_v10, 0.0 }
 0x4ae   : > { %870 = vadd.xlane.f32.xlu1 %v869_v11 }
 0x4be   : > { %v399_v12 = vpop.xlane.xlu1 %398 }
 0x4bf   : > { %v400_v14 = vsub.f32 %v3767_v34, %v399_v12  ;;  %409 = vrot.lane.b32.xlu1 %v3745_v13, %s3626_s23 }
 0x4c1   : > { %v401_v15 = vmul.f32 1.442695, %v400_v14  ;;  %v810_v14 = vld [vmem:[%s4294_s3 + $0x30] sm:$0xf] }
 0x4c3   : > { %3488 = vpow2.f32 %v401_v15  ;;  %643 = vrot.lane.b32.xlu1 %v3749_v20, %s3626_s23 }
 0x4cd   : > { %v3489_v16 = vpop.eup %3488 }
 0x4ce   : > { %v403_v17 = vsel %vm343_vm2, %v3489_v16, 0.0 }
 0x4cf   : > { %404 = vadd.xlane.f32.xlu0 %v403_v17 }
 0x4e5   : > { %878 = vrot.lane.b32.xlu0 %v3753_v25, %s3626_s23 }
 0x50a   : > { %v636_v18 = vpop.xlane.xlu1 %635 }
 0x50b   : > { %3490 = vrcp.f32 %v636_v18  ;;  %v815_v18 = vsel %vm414_vm7, %v810_v14, 0 }
 0x50e   : > { %v753_v19 = vpop.xlane.xlu1 %752 }
 0x50f   : > { %3492 = vrcp.f32 %v753_v19 }
 0x515   : > { %v3491_v21 = vpop.eup %3490 }
 0x516   : > { %v638_v22 = vmul.f32 %v3491_v21, %v3483_v61 }
 0x518   : > { %v639_v23 = vpack.c.bf16 %v638_v22, %v638_v22  ;;  %v927_v22 = vld [vmem:[%s4294_s3 + $0x40] sm:$0xf] }
 0x519   : > { %v3493_v24 = vpop.eup %3492 }
 0x51a   : > { %641 = vrot.lane.b32.xlu1 %v639_v23, %s3627_s25  ;;  %v755_v27 = vmul.f32 %v3493_v24, %v3485_v62 }
 0x51c   : > { %v756_v28 = vpack.c.bf16 %v755_v27, %v755_v27 }
 0x51e   : > { %761 = vrot.lane.b32.xlu1 %v3812_v26, %s3626_s23  ;;  %s3630_s23 = smov 56  }
 0x522   : > { %758 = vrot.lane.b32.xlu1 %v756_v28, %s3628_s26  ;;  %v932_v28 = vsel %vm414_vm7, %v927_v22, 0 }
 0x526   : > { %977 = vrot.lane.b32.xlu1 %v3745_v13, %s3629_s30 }
 0x53b   : > { %v871_v29 = vpop.xlane.xlu1 %870 }
 0x53c   : > { %3494 = vrcp.f32 %v871_v29 }
 0x53f   : > { %v410_v30 = vpop.permute.xlu1 %409 }
 0x540   : > { %v416_v31 = vsel %vm414_vm7, %v410_v30, 0 }
 0x541   : > { %3151 = vmatpush3.bf16.msra.mxu0 %v416_v31 }
 0x542   : > { %3162 = vmatprep.subr.bf16.mxu0 %v3622_v1 }
 0x543   : > { %v644_v45 = vpop.permute.xlu1 %643 }
 0x544   : > { %v649_v48 = vsel %vm414_vm7, %v644_v45, 0 }
 0x546   : > { %v3495_v32 = vpop.eup %3494 }
 0x547   : > { %v873_v33 = vmul.f32 %v3495_v32, %v3487_v4 }
 0x549   : > { %v874_v34 = vpack.c.bf16 %v873_v33, %v873_v33 }
 0x54b   : > { %876 = vrot.lane.b32.xlu1 %v874_v34, %s3624_s16  ;;  %v523_v35 = vpop.f32.mrb[4].mxu1 }
 0x54c   : > { %v3160_v36 = vpop.f32.mrb[5].mxu1  ;;  %v529_v46 = vpack.c.bf16 %v523_v35, %v523_v35 }
 0x54d   : > { %v526_v37 = vpop.f32.mrb[6].mxu1 }
 0x54e   : > { %v3161_v38 = vpop.f32.mrb[7].mxu1 }
 0x54f   : > { %979 = vrot.lane.b32.xlu1 %v3749_v20, %s3629_s30 }
 0x553   : > { %981 = vrot.lane.b32.xlu1 %v3753_v25, %s3629_s30 }
 0x557   : > { %975 = vrot.lane.b32.xlu1 %v3753_v25, %s3625_s17 }
 0x55c   : > { %v405_v39 = vpop.xlane.xlu0 %404 }
 0x55d   : > { %3496 = vrcp.f32 %v405_v39 }
 0x560   : > { %v879_v52 = vpop.permute.xlu0 %878 }
 0x561   : > { %v884_v54 = vsel %vm414_vm7, %v879_v52, 0 }
 0x567   : > { %v3497_v40 = vpop.eup %3496 }
 0x568   : > { %v407_v42 = vmul.f32 %v3497_v40, %v3489_v16 }
 0x56a   : > { %v408_v43 = vpack.c.bf16 %v407_v42, %v407_v42 }
 0x56c   : > { %3153 = vmatmul.mubr.msk.bf16.vlgmr.msra.gmra.mrb[12].mxu0 %vm343_vm2, %v408_v43 }
 0x56d   : > { %3163 = vmatpush3.bf16.msra.mxu0 %v535_v44  ;;  %3164 = vmatprep.mubr.msk.bf16.mxu0 %vm3623_vm0, %v3622_v1 }
 0x56e   : > { %3174 = vmatprep.subr.bf16.mxu0 %v3622_v1 }
 0x574   : > { %3165 = vmatmul.mubr.msk.bf16.vlgmr.msra.gmra.mrb[16].mxu0 %vm343_vm2, %v529_v46 }
 0x575   : > { %3175 = vmatpush3.bf16.msra.mxu0 %v649_v48  ;;  %3176 = vmatprep.mubr.msk.bf16.mxu0 %vm3623_vm0, %v3622_v1 }
 0x576   : > { %3186 = vmatprep.subr.bf16.mxu0 %v3622_v1 }
 0x58c   : > { %v642_v49 = vpop.permute.xlu1 %641 }
 0x58d   : > { %3177 = vmatmul.mubr.msk.bf16.vlgmr.msra.gmra.mrb[20].mxu0 %vm343_vm2, %v642_v49 }
 0x58e   : > { %3188 = vmatprep.mubr.msk.bf16.mxu0 %vm3623_vm0, %v3622_v1 }
 0x590   : > { %v762_v50 = vpop.permute.xlu1 %761 }
 0x591   : > { %v767_v51 = vsel %vm414_vm7, %v762_v50, 0 }
 0x592   : > { %3187 = vmatpush3.bf16.msra.mxu0 %v767_v51 }
 0x593   : > { %3198 = vmatprep.subr.bf16.mxu0 %v3622_v1 }
 0x594   : > { %v759_v53 = vpop.permute.xlu1 %758 }
 0x595   : > { %3189 = vmatmul.mubr.msk.bf16.vlgmr.msra.gmra.mrb[24].mxu0 %vm343_vm2, %v759_v53 }
 0x596   : > { %3199 = vmatpush3.bf16.msra.mxu0 %v884_v54  ;;  %3200 = vmatprep.mubr.msk.bf16.mxu0 %vm3623_vm0, %v3622_v1 }
 0x597   : > { %3210 = vmatprep.subr.bf16.mxu0 %v3622_v1 }
 0x598   : > { %v978_v55 = vpop.permute.xlu1 %977 }
 0x599   : > { %v987_v57 = vsel %vm343_vm2, %v978_v55, 0 }
 0x5bd   : > { %v877_v56 = vpop.permute.xlu1 %876 }
 0x5be   : > { %3201 = vmatmul.mubr.msk.bf16.vlgmr.msra.gmra.mrb[28].mxu0 %vm343_vm2, %v877_v56 }
 0x5bf   : > { %3211 = vmatpush3.bf16.xpose.msra.mxu0 %v987_v57  ;;  %3216 = vmatprep.mubr.msk.bf16.mxu0 %vm3623_vm0, %v3622_v1 }
 0x5c0   : > { %3212 = vmatprep.subr.bf16.mxu0 %v3622_v1 }
 0x5c1   : > { %v980_v60 = vpop.permute.xlu1 %979 }
 0x5c2   : > { %v990_v61 = vsel %vm343_vm2, %v980_v60, 0 }
 0x5c5   : > { %v982_v62 = vpop.permute.xlu1 %981 }
 0x5c6   : > { %v993_v63 = vsel %vm343_vm2, %v982_v62, 0 }
 0x5c7   : > { %3213 = vmatpush3.bf16.xpose.msra.mxu0 %v990_v61 }
 0x5c8   : > { %3214 = vmatprep.subr.bf16.mxu0 %v3622_v1 }
 0x5c9   : > { %v976_v0 = vpop.permute.xlu1 %975 }
 0x5cf   : > { %3215 = vmatpush3.bf16.xpose.msra.mxu0 %v993_v63 }
 0x5d0   : > { %3238 = vmatprep.subr.bf16.mxu0 %v3622_v1 }
 0x5d6   : > { %3217 = vmatmul.mubr.msk.bf16.vlgmr.msra.gmra.mrb[32].mxu0 %vm343_vm2, %v976_v0 }
 0x5d7   : > { %3240 = vmatprep.mubr.msk.bf16.mxu0 %vm3623_vm0, %v3622_v1 }
 0x63f   : > { %v452_v3 = vpop.f32.mrb[12].mxu0 }
 0x640   : > { %v458_v4 = vpack.c.bf16 %v452_v3, %v452_v3  ;;  %v3154_v5 = vpop.f32.mrb[13].mxu0 }
 0x641   : > { %v455_v7 = vpop.f32.mrb[14].mxu0 }
 0x642   : > { %v3155_v8 = vpop.f32.mrb[15].mxu0  ;;  %3171 = vmatmul.mubr.msk.bf16.vlgmr.msra.gmra.mrb[8].mxu1 %vm343_vm2, %v458_v4 }
 0x643   : > { %3181 = vmatpush3.bf16.msra.mxu1 %v697_v6  ;;  %3182 = vmatprep.mubr.msk.bf16.mxu1 %vm3623_vm0, %v3622_v1 }
 0x644   : > { %3192 = vmatprep.subr.bf16.mxu1 %v3622_v1 }
 0x647   : > { %v571_v9 = vpop.f32.mrb[16].mxu0 }
 0x648   : > { %v3166_v10 = vpop.f32.mrb[17].mxu0 }
 0x649   : > { %v574_v11 = vpop.f32.mrb[18].mxu0 }
 0x64a   : > { %v3167_v12 = vpop.f32.mrb[19].mxu0 }
 0x660   : > { %v685_v15 = vpop.f32.mrb[20].mxu0 }
 0x661   : > { %v691_v16 = vpack.c.bf16 %v685_v15, %v685_v15  ;;  %v3178_v17 = vpop.f32.mrb[21].mxu0 }
 0x662   : > { %v688_v19 = vpop.f32.mrb[22].mxu0 }
 0x663   : > { %v3179_v21 = vpop.f32.mrb[23].mxu0  ;;  %3183 = vmatmul.mubr.msk.bf16.vlgmr.msra.gmra.mrb[12].mxu1 %vm343_vm2, %v691_v16 }
 0x664   : > { %3193 = vmatpush3.bf16.msra.mxu1 %v815_v18  ;;  %3194 = vmatprep.mubr.msk.bf16.mxu1 %vm3623_vm0, %v3622_v1 }
 0x665   : > { %3204 = vmatprep.subr.bf16.mxu1 %v3622_v1 }
 0x668   : > { %v803_v23 = vpop.f32.mrb[24].mxu0 }
 0x669   : > { %v809_v24 = vpack.c.bf16 %v803_v23, %v803_v23  ;;  %v3190_v27 = vpop.f32.mrb[25].mxu0 }
 0x66a   : > { %v806_v29 = vpop.f32.mrb[26].mxu0 }
 0x66b   : > { %v3191_v30 = vpop.f32.mrb[27].mxu0  ;;  %3195 = vmatmul.mubr.msk.bf16.vlgmr.msra.gmra.mrb[16].mxu1 %vm343_vm2, %v809_v24 }
 0x66c   : > { %3205 = vmatpush3.bf16.msra.mxu1 %v932_v28  ;;  %3206 = vmatprep.mubr.msk.bf16.mxu1 %vm3623_vm0, %v3622_v1 }
 0x66d   : > { %3220 = vmatprep.subr.bf16.mxu1 %v3622_v1 }
 0x691   : > { %v920_v31 = vpop.f32.mrb[28].mxu0 }
 0x692   : > { %v926_v32 = vpack.c.bf16 %v920_v31, %v920_v31  ;;  %v3202_v33 = vpop.f32.mrb[29].mxu0 }
 0x693   : > { %v923_v34 = vpop.f32.mrb[30].mxu0 }
 0x694   : > { %v3203_v35 = vpop.f32.mrb[31].mxu0  ;;  %3207 = vmatmul.mubr.msk.bf16.vlgmr.msra.gmra.mrb[20].mxu1 %vm343_vm2, %v926_v32 }
 0x695   : > { %3222 = vmatprep.mubr.msk.bf16.mxu1 %vm3623_vm0, %v3622_v1 }
 0x6a9   : > { %v1029_v36 = vpop.f32.mrb[32].mxu0 }
 0x6aa   : > { %v3892_v37 = vmul.f32 0.35355338, %v1029_v36  ;;  %v3218_v38 = vpop.f32.mrb[33].mxu0 }
 0x6ab   : > { %v1032_v39 = vpop.f32.mrb[34].mxu0 }
 0x6ac   : > { %v3219_v40 = vpop.f32.mrb[35].mxu0  ;;  %v1036_v41 = vsel %vm343_vm2, %v3892_v37, -inf  ;;  %v1145_v42 = vsel %vm460_vm3, %v3892_v37, -inf  ;;  %v1261_v4 = vsel %vm623_vm4, %v3892_v37, -inf  ;;  %v1377_v5 = vsel %vm740_vm5, %v3892_v37, -inf }
 0x6ad   : > { %1037 = vmax.xlane.f32.xlu0 %v1036_v41  ;;  %v1493_v7 = vsel %vm858_vm6, %v3892_v37, -inf }
 0x6b1   : > { %1146 = vmax.xlane.f32.xlu0 %v1145_v42 }
 0x6c7   : > { %1048 = vrot.lane.b32.xlu0 %v3745_v13, %s3630_s23 }
 0x715   : > { %v617_v43 = vpop.f32.mrb[8].mxu1 }
 0x716   : > { %v618_v44 = vadd.f32 %v617_v43, %v571_v9  ;;  %v3172_v45 = vpop.f32.mrb[9].mxu1 }
 0x717   : > { %v620_v46 = vpop.f32.mrb[10].mxu1 }
 0x718   : > { %v3173_v48 = vpop.f32.mrb[11].mxu1 }
 0x736   : > { %v733_v49 = vpop.f32.mrb[12].mxu1 }
 0x737   : > { %v739_v50 = vadd.f32 %v733_v49, %v618_v44  ;;  %v3184_v51 = vpop.f32.mrb[13].mxu1 }
 0x738   : > { %v736_v52 = vpop.f32.mrb[14].mxu1 }
 0x739   : > { %v3185_v53 = vpop.f32.mrb[15].mxu1 }
 0x73a   : > { %v1038_v54 = vpop.xlane.xlu0 %1037 }
 0x73b   : > { %v1039_v55 = vsub.f32 %v3892_v37, %v1038_v54 }
 0x73d   : > { %v1040_v56 = vmul.f32 1.442695, %v1039_v55 }
 0x73e   : > { %v1147_v57 = vpop.xlane.xlu0 %1146  ;;  %v851_v58 = vpop.f32.mrb[16].mxu1 }
 0x73f   : > { %3498 = vpow2.f32 %v1040_v56  ;;  %v857_v59 = vadd.f32 %v851_v58, %v739_v50  ;;  %v3196_v60 = vpop.f32.mrb[17].mxu1  ;;  %v1148_v6 = vsub.f32 %v3892_v37, %v1147_v57 }
 0x740   : > { %v854_v61 = vpop.f32.mrb[18].mxu1 }
 0x741   : > { %v3197_v62 = vpop.f32.mrb[19].mxu1  ;;  %v1149_v8 = vmul.f32 1.442695, %v1148_v6 }
 0x742   : > { %v1049_v63 = vpop.permute.xlu0 %1048 }
 0x743   : > { %v1054_v0 = vsel %vm414_vm7, %v1049_v63, 0  ;;  %3500 = vpow2.f32 %v1149_v8 }
 0x744   : > { %3221 = vmatpush3.bf16.msra.mxu1 %v1054_v0 }
 0x745   : > { %3226 = vmatprep.subr.bf16.mxu1 %v3622_v1 }
 0x749   : > { %v3499_v2 = vpop.eup %3498 }
 0x74a   : > { %v1042_v3 = vsel %vm343_vm2, %v3499_v2, 0.0 }
 0x74b   : > { %1043 = vadd.xlane.f32.xlu1 %v1042_v3 }
 0x74d   : > { %v3501_v9 = vpop.eup %3500 }
 0x74f   : > { %1262 = vmax.xlane.f32.xlu1 %v1261_v4 }
 0x753   : > { %1378 = vmax.xlane.f32.xlu1 %v1377_v5 }
 0x757   : > { %1494 = vmax.xlane.f32.xlu1 %v1493_v7 }
 0x767   : > { %v968_v10 = vpop.f32.mrb[20].mxu1 }
 0x768   : > { %v3911_v11 = vadd.f32 %v968_v10, %v857_v59  ;;  %1152 = vrot.lane.b32.xlu1 %v3501_v9, %s3625_s17  ;;  %v3208_v12 = vpop.f32.mrb[21].mxu1 }
 0x769   : > { %v971_v14 = vpop.f32.mrb[22].mxu1 }
 0x76a   : > { %v3209_v15 = vpop.f32.mrb[23].mxu1 }
 0x7d8   : > { %v1044_v16 = vpop.xlane.xlu1 %1043 }
 0x7d9   : > { %3502 = vrcp.f32 %v1044_v16 }
 0x7dc   : > { %v1263_v17 = vpop.xlane.xlu1 %1262 }
 0x7dd   : > { %v1264_v18 = vsub.f32 %v3892_v37, %v1263_v17 }
 0x7df   : > { %v1265_v19 = vmul.f32 1.442695, %v1264_v18 }
 0x7e0   : > { %v1379_v21 = vpop.xlane.xlu1 %1378 }
 0x7e1   : > { %3504 = vpow2.f32 %v1265_v19  ;;  %v1380_v22 = vsub.f32 %v3892_v37, %v1379_v21 }
 0x7e3   : > { %v3503_v23 = vpop.eup %3502  ;;  %v1381_v24 = vmul.f32 1.442695, %v1380_v22 }
 0x7e4   : > { %v1046_v27 = vmul.f32 %v3503_v23, %v3499_v2  ;;  %v1495_v28 = vpop.xlane.xlu1 %1494 }
 0x7e5   : > { %3506 = vpow2.f32 %v1381_v24  ;;  %v1496_v29 = vsub.f32 %v3892_v37, %v1495_v28  ;;  %v1097_v37 = vld [vmem:[%s4294_s3 + $0x4] sm:$0xf] }
 0x7e6   : > { %v1047_v30 = vpack.c.bf16 %v1046_v27, %v1046_v27  ;;  %v1102_v38 = vsel %vm414_vm7, %v1097_v37, 0 }
 0x7e7   : > { %v1497_v31 = vmul.f32 1.442695, %v1496_v29 }
 0x7e8   : > { %v1153_v32 = vpop.permute.xlu1 %1152  ;;  %3223 = vmatmul.mubr.msk.bf16.vlgmr.msra.gmra.mrb[24].mxu1 %vm343_vm2, %v1047_v30 }
 0x7e9   : > { %3508 = vpow2.f32 %v1497_v31  ;;  %v1155_v33 = vsel %vm343_vm2, %v1153_v32, 0.0  ;;  %3228 = vmatprep.mubr.msk.bf16.mxu1 %vm3623_vm0, %v3622_v1  ;;  %3227 = vmatpush3.bf16.msra.mxu1 %v1102_v38 }
 0x7ea   : > { %1156 = vadd.xlane.f32.xlu1 %v1155_v33  ;;  %3232 = vmatprep.subr.bf16.mxu1 %v3622_v1 }
 0x7eb   : > { %v3505_v34 = vpop.eup %3504 }
 0x7ec   : > { %1268 = vrot.lane.b32.xlu0 %v3505_v34, %s3627_s25 }
 0x7ef   : > { %v3507_v35 = vpop.eup %3506 }
 0x7f0   : > { %1384 = vrot.lane.b32.xlu0 %v3507_v35, %s3628_s26 }
 0x7f3   : > { %v3509_v36 = vpop.eup %3508 }
 0x7f4   : > { %1500 = vrot.lane.b32.xlu0 %v3509_v36, %s3624_s16 }
 0x7fb   : > { %1164 = vrot.lane.b32.xlu1 %v3779_v47, %s3630_s23 }
 0x7ff   : > { %1280 = vrot.lane.b32.xlu1 %v3749_v20, %s3630_s23 }
 0x85e   : > { %v1269_v39 = vpop.permute.xlu0 %1268 }
 0x85f   : > { %v1271_v40 = vsel %vm343_vm2, %v1269_v39, 0.0 }
 0x860   : > { %1272 = vadd.xlane.f32.xlu0 %v1271_v40 }
 0x862   : > { %v1385_v41 = vpop.permute.xlu0 %1384 }
 0x863   : > { %v1387_v42 = vsel %vm343_vm2, %v1385_v41, 0.0  ;;  %v1445_v41 = vld [vmem:[%s4294_s3 + $0x34] sm:$0xf] }
 0x864   : > { %1388 = vadd.xlane.f32.xlu0 %v1387_v42 }
 0x866   : > { %v1501_v43 = vpop.permute.xlu0 %1500 }
 0x867   : > { %v1503_v44 = vsel %vm343_vm2, %v1501_v43, 0.0 }
 0x868   : > { %1504 = vadd.xlane.f32.xlu0 %v1503_v44 }
 0x877   : > { %v1157_v45 = vpop.xlane.xlu1 %1156 }
 0x878   : > { %3510 = vrcp.f32 %v1157_v45  ;;  %v1450_v45 = vsel %vm414_vm7, %v1445_v41, 0 }
 0x87b   : > { %v1165_v50 = vpop.permute.xlu1 %1164 }
 0x87c   : > { %v1170_v55 = vsel %vm414_vm7, %v1165_v50, 0 }
 0x87f   : > { %v1281_v60 = vpop.permute.xlu1 %1280 }
 0x880   : > { %v1286_v0 = vsel %vm414_vm7, %v1281_v60, 0 }
 0x882   : > { %v3511_v46 = vpop.eup %3510 }
 0x883   : > { %v1159_v48 = vmul.f32 %v3511_v46, %v3501_v9  ;;  %v1213_v9 = vld [vmem:[%s4294_s3 + $0x14] sm:$0xf] }
 0x884   : > { %v1218_v10 = vsel %vm414_vm7, %v1213_v9, 0 }
 0x885   : > { %v1160_v49 = vpack.c.bf16 %v1159_v48, %v1159_v48  ;;  %3239 = vmatpush3.bf16.msra.mxu0 %v1218_v10 }
 0x886   : > { %3250 = vmatprep.subr.bf16.mxu0 %v3622_v1 }
 0x887   : > { %1162 = vrot.lane.b32.xlu0 %v1160_v49, %s3625_s17  ;;  %v1561_v49 = vld [vmem:[%s4294_s3 + $0x44] sm:$0xf] }
 0x88b   : > { %1512 = vrot.lane.b32.xlu0 %v3753_v25, %s3630_s23 }
 0x88f   : > { %1611 = vrot.lane.b32.xlu0 %v3745_v13, %s3631_s7 }
 0x893   : > { %1613 = vrot.lane.b32.xlu0 %v3749_v20, %s3631_s7 }
 0x897   : > { %1609 = vrot.lane.b32.xlu0 %v3753_v25, %s3627_s25 }
 0x8bb   : > { %v1090_v51 = vpop.f32.mrb[24].mxu1 }
 0x8bc   : > { %v1096_v52 = vpack.c.bf16 %v1090_v51, %v1090_v51  ;;  %v3224_v53 = vpop.f32.mrb[25].mxu1 }
 0x8bd   : > { %v1093_v54 = vpop.f32.mrb[26].mxu1  ;;  %v1566_v53 = vsel %vm414_vm7, %v1561_v49, 0 }
 0x8be   : > { %v3225_v56 = vpop.f32.mrb[27].mxu1  ;;  %3229 = vmatmul.mubr.msk.bf16.vlgmr.msra.gmra.mrb[28].mxu1 %vm343_vm2, %v1096_v52 }
 0x8bf   : > { %3233 = vmatpush3.bf16.msra.mxu1 %v1170_v55  ;;  %3234 = vmatprep.mubr.msk.bf16.mxu1 %vm3623_vm0, %v3622_v1 }
 0x8c0   : > { %3244 = vmatprep.subr.bf16.mxu1 %v3622_v1 }
 0x8ed   : > { %v1273_v57 = vpop.xlane.xlu0 %1272 }
 0x8ee   : > { %3512 = vrcp.f32 %v1273_v57 }
 0x8f1   : > { %v1389_v58 = vpop.xlane.xlu0 %1388 }
 0x8f2   : > { %3514 = vrcp.f32 %v1389_v58 }
 0x8f5   : > { %v1505_v59 = vpop.xlane.xlu0 %1504 }
 0x8f6   : > { %3516 = vrcp.f32 %v1505_v59 }
 0x8f8   : > { %v3513_v61 = vpop.eup %3512 }
 0x8f9   : > { %v1163_v62 = vpop.permute.xlu0 %1162  ;;  %v1275_v63 = vmul.f32 %v3513_v61, %v3505_v34 }
 0x8fa   : > { %3235 = vmatmul.mubr.msk.bf16.vlgmr.msra.gmra.mrb[32].mxu1 %vm343_vm2, %v1163_v62 }
 0x8fb   : > { %3245 = vmatpush3.bf16.msra.mxu1 %v1286_v0  ;;  %v1276_v2 = vpack.c.bf16 %v1275_v63, %v1275_v63  ;;  %3246 = vmatprep.mubr.msk.bf16.mxu1 %vm3623_vm0, %v3622_v1 }
 0x8fc   : > { %v3515_v3 = vpop.eup %3514  ;;  %3256 = vmatprep.subr.bf16.mxu1 %v3622_v1 }
 0x8fd   : > { %1278 = vrot.lane.b32.xlu1 %v1276_v2, %s3627_s25  ;;  %v1391_v4 = vmul.f32 %v3515_v3, %v3507_v35  ;;  %v1513_v16 = vpop.permute.xlu0 %1512  ;;  %v1329_v35 = vld [vmem:[%s4294_s3 + $0x24] sm:$0xf] }
 0x8fe   : > { %v1518_v18 = vsel %vm414_vm7, %v1513_v16, 0  ;;  %v1334_v38 = vsel %vm414_vm7, %v1329_v35, 0 }
 0x8ff   : > { %v1392_v6 = vpack.c.bf16 %v1391_v4, %v1391_v4 }
 0x900   : > { %v3517_v5 = vpop.eup %3516 }
 0x901   : > { %1396 = vrot.lane.b32.xlu1 %v3812_v26, %s3630_s23  ;;  %v1507_v7 = vmul.f32 %v3517_v5, %v3509_v36  ;;  %v1612_v19 = vpop.permute.xlu0 %1611  ;;  %s3632_s23 = smov 48  }
 0x902   : > { %v1621_v22 = vsel %vm343_vm2, %v1612_v19, 0 }
 0x903   : > { %v1508_v8 = vpack.c.bf16 %v1507_v7, %v1507_v7 }
 0x905   : > { %1394 = vrot.lane.b32.xlu1 %v1392_v6, %s3628_s26  ;;  %v1614_v23 = vpop.permute.xlu0 %1613 }
 0x906   : > { %v1624_v24 = vsel %vm343_vm2, %v1614_v23, 0 }
 0x909   : > { %1510 = vrot.lane.b32.xlu1 %v1508_v8, %s3624_s16  ;;  %v1610_v34 = vpop.permute.xlu0 %1609 }
 0x90d   : > { %1615 = vrot.lane.b32.xlu1 %v3753_v25, %s3631_s7  ;;  %s3633_s7 = smov 72  }
 0x96f   : > { %v1279_v12 = vpop.permute.xlu1 %1278 }
 0x970   : > { %3247 = vmatmul.mubr.msk.bf16.vlgmr.msra.gmra.mrb[36].mxu1 %vm343_vm2, %v1279_v12 }
 0x971   : > { %3258 = vmatprep.mubr.msk.bf16.mxu1 %vm3623_vm0, %v3622_v1 }
 0x973   : > { %v1397_v14 = vpop.permute.xlu1 %1396 }
 0x974   : > { %v1402_v15 = vsel %vm414_vm7, %v1397_v14, 0 }
 0x975   : > { %3257 = vmatpush3.bf16.msra.mxu1 %v1402_v15 }
 0x976   : > { %3268 = vmatprep.subr.bf16.mxu1 %v3622_v1 }
 0x977   : > { %v1395_v17 = vpop.permute.xlu1 %1394 }
 0x978   : > { %3259 = vmatmul.mubr.msk.bf16.vlgmr.msra.gmra.mrb[40].mxu1 %vm343_vm2, %v1395_v17 }
 0x979   : > { %3269 = vmatpush3.bf16.msra.mxu1 %v1518_v18  ;;  %3270 = vmatprep.mubr.msk.bf16.mxu1 %vm3623_vm0, %v3622_v1 }
 0x97a   : > { %3280 = vmatprep.subr.bf16.mxu1 %v3622_v1 }
 0x97b   : > { %v1511_v21 = vpop.permute.xlu1 %1510 }
 0x97f   : > { %v1616_v27 = vpop.permute.xlu1 %1615 }
 0x980   : > { %3271 = vmatmul.mubr.msk.bf16.vlgmr.msra.gmra.mrb[44].mxu1 %vm343_vm2, %v1511_v21  ;;  %v1627_v28 = vsel %vm343_vm2, %v1616_v27, 0 }
 0x981   : > { %3286 = vmatprep.mubr.msk.bf16.mxu1 %vm3623_vm0, %v3622_v1 }
 0x982   : > { %3281 = vmatpush3.bf16.xpose.msra.mxu1 %v1621_v22 }
 0x983   : > { %3282 = vmatprep.subr.bf16.mxu1 %v3622_v1 }
 0x98a   : > { %3283 = vmatpush3.bf16.xpose.msra.mxu1 %v1624_v24 }
 0x98b   : > { %3284 = vmatprep.subr.bf16.mxu1 %v3622_v1 }
 0x991   : > { %v1138_v29 = vpop.f32.mrb[28].mxu1 }
 0x992   : > { %v3986_v30 = vadd.f32 %v1138_v29, %v3911_v11  ;;  %v3230_v31 = vpop.f32.mrb[29].mxu1  ;;  %3285 = vmatpush3.bf16.xpose.msra.mxu1 %v1627_v28 }
 0x993   : > { %v1141_v32 = vpop.f32.mrb[30].mxu1  ;;  %3308 = vmatprep.subr.bf16.mxu1 %v3622_v1 }
 0x994   : > { %v3231_v33 = vpop.f32.mrb[31].mxu1 }
 0x999   : > { %3287 = vmatmul.mubr.msk.bf16.vlgmr.msra.gmra.mrb[48].mxu1 %vm343_vm2, %v1610_v34 }
 0x99a   : > { %3310 = vmatprep.mubr.msk.bf16.mxu1 %vm3623_vm0, %v3622_v1 }
 0x9cd   : > { %v1206_v36 = vpop.f32.mrb[32].mxu1 }
 0x9ce   : > { %v1212_v37 = vpack.c.bf16 %v1206_v36, %v1206_v36  ;;  %v3236_v11 = vpop.f32.mrb[33].mxu1 }
 0x9cf   : > { %v1209_v39 = vpop.f32.mrb[34].mxu1 }
 0x9d0   : > { %v3237_v40 = vpop.f32.mrb[35].mxu1  ;;  %3241 = vmatmul.mubr.msk.bf16.vlgmr.msra.gmra.mrb[36].mxu0 %vm343_vm2, %v1212_v37 }
 0x9d1   : > { %3251 = vmatpush3.bf16.msra.mxu0 %v1334_v38  ;;  %3252 = vmatprep.mubr.msk.bf16.mxu0 %vm3623_vm0, %v3622_v1 }
 0x9d2   : > { %3262 = vmatprep.subr.bf16.mxu0 %v3622_v1 }
 0xa43   : > { %v1322_v42 = vpop.f32.mrb[36].mxu1 }
 0xa44   : > { %v1328_v43 = vpack.c.bf16 %v1322_v42, %v1322_v42  ;;  %v3248_v44 = vpop.f32.mrb[37].mxu1 }
 0xa45   : > { %v1325_v46 = vpop.f32.mrb[38].mxu1 }
 0xa46   : > { %v3249_v48 = vpop.f32.mrb[39].mxu1  ;;  %3253 = vmatmul.mubr.msk.bf16.vlgmr.msra.gmra.mrb[40].mxu0 %vm343_vm2, %v1328_v43 }
 0xa47   : > { %3263 = vmatpush3.bf16.msra.mxu0 %v1450_v45  ;;  %3264 = vmatprep.mubr.msk.bf16.mxu0 %vm3623_vm0, %v3622_v1 }
 0xa48   : > { %3274 = vmatprep.subr.bf16.mxu0 %v3622_v1 }
 0xa4b   : > { %v1438_v50 = vpop.f32.mrb[40].mxu1 }
 0xa4c   : > { %v1444_v51 = vpack.c.bf16 %v1438_v50, %v1438_v50  ;;  %v3260_v52 = vpop.f32.mrb[41].mxu1 }
 0xa4d   : > { %v1441_v54 = vpop.f32.mrb[42].mxu1 }
 0xa4e   : > { %v3261_v55 = vpop.f32.mrb[43].mxu1  ;;  %3265 = vmatmul.mubr.msk.bf16.vlgmr.msra.gmra.mrb[44].mxu0 %vm343_vm2, %v1444_v51 }
 0xa4f   : > { %3275 = vmatpush3.bf16.msra.mxu0 %v1566_v53  ;;  %3276 = vmatprep.mubr.msk.bf16.mxu0 %vm3623_vm0, %v3622_v1 }
 0xa50   : > { %3290 = vmatprep.subr.bf16.mxu0 %v3622_v1 }
 0xa53   : > { %v1554_v56 = vpop.f32.mrb[44].mxu1 }
 0xa54   : > { %v1560_v57 = vpack.c.bf16 %v1554_v56, %v1554_v56  ;;  %v3272_v58 = vpop.f32.mrb[45].mxu1 }
 0xa55   : > { %v1557_v59 = vpop.f32.mrb[46].mxu1 }
 0xa56   : > { %v3273_v60 = vpop.f32.mrb[47].mxu1  ;;  %3277 = vmatmul.mubr.msk.bf16.vlgmr.msra.gmra.mrb[48].mxu0 %vm343_vm2, %v1560_v57 }
 0xa57   : > { %3292 = vmatprep.mubr.msk.bf16.mxu0 %vm3623_vm0, %v3622_v1 }
 0xa6c   : > { %v1663_v61 = vpop.f32.mrb[48].mxu1 }
 0xa6d   : > { %v1669_v62 = vmul.f32 0.35355338, %v1663_v61  ;;  %v3288_v63 = vpop.f32.mrb[49].mxu1 }
 0xa6e   : > { %v1666_v0 = vpop.f32.mrb[50].mxu1 }
 0xa6f   : > { %v3289_v2 = vpop.f32.mrb[51].mxu1  ;;  %v1779_v3 = vsel %vm460_vm3, %v1669_v62, -inf  ;;  %v1670_v4 = vsel %vm343_vm2, %v1669_v62, -inf  ;;  %v1895_v5 = vsel %vm623_vm4, %v1669_v62, -inf  ;;  %v2011_v6 = vsel %vm740_vm5, %v1669_v62, -inf }
 0xa70   : > { %1780 = vmax.xlane.f32.xlu0 %v1779_v3  ;;  %1671 = vmax.xlane.f32.xlu1 %v1670_v4  ;;  %v2127_v7 = vsel %vm858_vm6, %v1669_v62, -inf }
 0xa74   : > { %1896 = vmax.xlane.f32.xlu1 %v1895_v5  ;;  %v1731_v5 = vld [vmem:[%s4294_s3 + $0x8] sm:$0xf] }
 0xa78   : > { %2012 = vmax.xlane.f32.xlu1 %v2011_v6  ;;  %v1736_v6 = vsel %vm414_vm7, %v1731_v5, 0 }
 0xa7c   : > { %2128 = vmax.xlane.f32.xlu1 %v2127_v7 }
 0xaa3   : > { %v1254_v8 = vpop.f32.mrb[36].mxu0 }
 0xaa4   : > { %v1260_v9 = vadd.f32 %v1254_v8, %v3986_v30  ;;  %v3242_v10 = vpop.f32.mrb[37].mxu0 }
 0xaa5   : > { %v1257_v12 = vpop.f32.mrb[38].mxu0 }
 0xaa6   : > { %v3243_v14 = vpop.f32.mrb[39].mxu0 }
 0xafd   : > { %v1781_v15 = vpop.xlane.xlu0 %1780  ;;  %v1672_v16 = vpop.xlane.xlu1 %1671 }
 0xafe   : > { %v1782_v17 = vsub.f32 %v1669_v62, %v1781_v15  ;;  %v1673_v18 = vsub.f32 %v1669_v62, %v1672_v16 }
 0xb00   : > { %v1783_v19 = vmul.f32 1.442695, %v1782_v17  ;;  %v1674_v21 = vmul.f32 1.442695, %v1673_v18 }
 0xb01   : > { %v1897_v22 = vpop.xlane.xlu1 %1896 }
 0xb02   : > { %3518 = vpow2.f32 %v1783_v19  ;;  %v1898_v32 = vsub.f32 %v1669_v62, %v1897_v22 }
 0xb03   : > { %3520 = vpow2.f32 %v1674_v21 }
 0xb04   : > { %v1899_v35 = vmul.f32 1.442695, %v1898_v32 }
 0xb05   : > { %v2013_v23 = vpop.xlane.xlu1 %2012 }
 0xb06   : > { %v2014_v36 = vsub.f32 %v1669_v62, %v2013_v23 }
 0xb08   : > { %v2015_v40 = vmul.f32 1.442695, %v2014_v36 }
 0xb09   : > { %v2129_v24 = vpop.xlane.xlu1 %2128 }
 0xb0a   : > { %v2130_v27 = vsub.f32 %v1669_v62, %v2129_v24 }
 0xb0c   : > { %v4025_v28 = vpop.eup %3518  ;;  %v2131_v29 = vmul.f32 1.442695, %v2130_v27 }
 0xb0d   : > { %v3521_v31 = vpop.eup %3520  ;;  %1786 = vrot.lane.b32.xlu1 %v4025_v28, %s3625_s17 }
 0xb0e   : > { %3522 = vpow2.f32 %v2131_v29  ;;  %v1676_v30 = vsel %vm343_vm2, %v3521_v31, 0.0 }
 0xb0f   : > { %1677 = vadd.xlane.f32.xlu0 %v1676_v30  ;;  %3524 = vpow2.f32 %v1899_v35 }
 0xb10   : > { %3526 = vpow2.f32 %v2015_v40 }
 0xb18   : > { %v4030_v33 = vpop.eup %3522 }
 0xb19   : > { %2134 = vrot.lane.b32.xlu1 %v4030_v33, %s3624_s16  ;;  %v1370_v34 = vpop.f32.mrb[40].mxu0  ;;  %v3525_v46 = vpop.eup %3524 }
 0xb1a   : > { %v1376_v37 = vadd.f32 %v1370_v34, %v1260_v9  ;;  %v3254_v11 = vpop.f32.mrb[41].mxu0  ;;  %v3527_v52 = vpop.eup %3526 }
 0xb1b   : > { %v1373_v38 = vpop.f32.mrb[42].mxu0 }
 0xb1c   : > { %v3255_v39 = vpop.f32.mrb[43].mxu0 }
 0xb21   : > { %v1486_v41 = vpop.f32.mrb[44].mxu0 }
 0xb22   : > { %v1492_v42 = vadd.f32 %v1486_v41, %v1376_v37  ;;  %v3266_v43 = vpop.f32.mrb[45].mxu0 }
 0xb23   : > { %v1489_v44 = vpop.f32.mrb[46].mxu0 }
 0xb24   : > { %v3267_v45 = vpop.f32.mrb[47].mxu0 }
 0xb25   : > { %1682 = vrot.lane.b32.xlu0 %v3745_v13, %s3632_s23 }
 0xb29   : > { %1902 = vrot.lane.b32.xlu0 %v3525_v46, %s3627_s25  ;;  %v1602_v48 = vpop.f32.mrb[48].mxu0 }
 0xb2a   : > { %v4037_v49 = vadd.f32 %v1602_v48, %v1492_v42  ;;  %v3278_v50 = vpop.f32.mrb[49].mxu0 }
 0xb2b   : > { %v1605_v51 = vpop.f32.mrb[50].mxu0 }
 0xb2c   : > { %v3279_v53 = vpop.f32.mrb[51].mxu0 }
 0xb2d   : > { %2018 = vrot.lane.b32.xlu0 %v3527_v52, %s3628_s26  ;;  %v1847_v53 = vld [vmem:[%s4294_s3 + $0x18] sm:$0xf] }
 0xb7f   : > { %v1787_v54 = vpop.permute.xlu1 %1786 }
 0xb80   : > { %v1789_v55 = vsel %vm343_vm2, %v1787_v54, 0.0  ;;  %v1852_v54 = vsel %vm414_vm7, %v1847_v53, 0 }
 0xb81   : > { %1790 = vadd.xlane.f32.xlu0 %v1789_v55  ;;  %3309 = vmatpush3.bf16.msra.mxu1 %v1852_v54 }
 0xb82   : > { %3320 = vmatprep.subr.bf16.mxu1 %v3622_v1 }
 0xb8b   : > { %v2135_v2 = vpop.permute.xlu1 %2134 }
 0xb8c   : > { %v2137_v4 = vsel %vm343_vm2, %v2135_v2, 0.0 }
 0xb9c   : > { %v1678_v56 = vpop.xlane.xlu0 %1677 }
 0xb9d   : > { %3528 = vrcp.f32 %v1678_v56 }
 0xba0   : > { %v1683_v57 = vpop.permute.xlu0 %1682 }
 0xba1   : > { %v1688_v58 = vsel %vm414_vm7, %v1683_v57, 0 }
 0xba2   : > { %3291 = vmatpush3.bf16.msra.mxu0 %v1688_v58 }
 0xba3   : > { %3296 = vmatprep.subr.bf16.mxu0 %v3622_v1 }
 0xba4   : > { %v1903_v59 = vpop.permute.xlu0 %1902 }
 0xba5   : > { %v1905_v60 = vsel %vm343_vm2, %v1903_v59, 0.0 }
 0xba6   : > { %1906 = vadd.xlane.f32.xlu1 %v1905_v60  ;;  %v1963_v60 = vld [vmem:[%s4294_s3 + $0x28] sm:$0xf] }
 0xba7   : > { %v3529_v61 = vpop.eup %3528 }
 0xba8   : > { %v1680_v62 = vmul.f32 %v3529_v61, %v3521_v31  ;;  %v2019_v63 = vpop.permute.xlu0 %2018 }
 0xba9   : > { %v2021_v0 = vsel %vm343_vm2, %v2019_v63, 0.0 }
 0xbaa   : > { %2022 = vadd.xlane.f32.xlu0 %v2021_v0  ;;  %v1681_v3 = vpack.c.bf16 %v1680_v62, %v1680_v62  ;;  %v1968_v0 = vsel %vm414_vm7, %v1963_v60, 0 }
 0xbac   : > { %3293 = vmatmul.mubr.msk.bf16.vlgmr.msra.gmra.mrb[52].mxu0 %vm343_vm2, %v1681_v3 }
 0xbad   : > { %3298 = vmatprep.mubr.msk.bf16.mxu0 %vm3623_vm0, %v3622_v1  ;;  %3297 = vmatpush3.bf16.msra.mxu0 %v1736_v6 }
 0xbae   : > { %2138 = vadd.xlane.f32.xlu0 %v2137_v4  ;;  %3302 = vmatprep.subr.bf16.mxu0 %v3622_v1 }
 0xbc4   : > { %1798 = vrot.lane.b32.xlu0 %v3779_v47, %s3632_s23 }
 0xbc8   : > { %2030 = vrot.lane.b32.xlu0 %v3812_v26, %s3632_s23 }
 0xc0e   : > { %v1791_v7 = vpop.xlane.xlu0 %1790 }
 0xc0f   : > { %3530 = vrcp.f32 %v1791_v7 }
 0xc19   : > { %v3531_v8 = vpop.eup %3530 }
 0xc1a   : > { %v1793_v9 = vmul.f32 %v3531_v8, %v4025_v28 }
 0xc1c   : > { %v1794_v10 = vpack.c.bf16 %v1793_v9, %v1793_v9 }
 0xc1e   : > { %1796 = vrot.lane.b32.xlu1 %v1794_v10, %s3625_s17  ;;  %v2195_v10 = vld [vmem:[%s4294_s3 + $0x48] sm:$0xf] }
 0xc22   : > { %1914 = vrot.lane.b32.xlu1 %v3749_v20, %s3632_s23 }
 0xc33   : > { %v1907_v12 = vpop.xlane.xlu1 %1906 }
 0xc34   : > { %3532 = vrcp.f32 %v1907_v12 }
 0xc37   : > { %v2023_v14 = vpop.xlane.xlu0 %2022 }
 0xc38   : > { %3534 = vrcp.f32 %v2023_v14 }
 0xc3b   : > { %v2139_v15 = vpop.xlane.xlu0 %2138 }
 0xc3c   : > { %3536 = vrcp.f32 %v2139_v15 }
 0xc3e   : > { %v3533_v16 = vpop.eup %3532 }
 0xc3f   : > { %v1909_v17 = vmul.f32 %v3533_v16, %v3525_v46  ;;  %v1799_v28 = vpop.permute.xlu0 %1798  ;;  %v2200_v16 = vsel %vm414_vm7, %v2195_v10, 0 }
 0xc41   : > { %v1910_v18 = vpack.c.bf16 %v1909_v17, %v1909_v17 }
 0xc42   : > { %v3535_v19 = vpop.eup %3534 }
 0xc43   : > { %1912 = vrot.lane.b32.xlu1 %v1910_v18, %s3627_s25  ;;  %v2025_v21 = vmul.f32 %v3535_v19, %v3527_v52  ;;  %v2031_v11 = vpop.permute.xlu0 %2030 }
 0xc44   : > { %v2036_v39 = vsel %vm414_vm7, %v2031_v11, 0 }
 0xc45   : > { %v2026_v22 = vpack.c.bf16 %v2025_v21, %v2025_v21 }
 0xc46   : > { %v3537_v23 = vpop.eup %3536 }
 0xc47   : > { %2028 = vrot.lane.b32.xlu0 %v2026_v22, %s3628_s26  ;;  %2146 = vrot.lane.b32.xlu1 %v3753_v25, %s3632_s23  ;;  %v2141_v24 = vmul.f32 %v3537_v23, %v4030_v33  ;;  %v1804_v33 = vsel %vm414_vm7, %v1799_v28, 0  ;;  %s3634_s23 = smov 40  }
 0xc49   : > { %v2142_v27 = vpack.c.bf16 %v2141_v24, %v2141_v24 }
 0xc4b   : > { %2144 = vrot.lane.b32.xlu0 %v2142_v27, %s3624_s16  ;;  %2245 = vrot.lane.b32.xlu1 %v3745_v13, %s3633_s7 }
 0xc4f   : > { %2249 = vrot.lane.b32.xlu0 %v3753_v25, %s3633_s7  ;;  %2247 = vrot.lane.b32.xlu1 %v3749_v20, %s3633_s7  ;;  %s4248_s7 = scalar_lea.hbm %s4296_s5, %s3020_s15 }
 0xc53   : > { %2243 = vrot.lane.b32.xlu1 %v3753_v25, %s3628_s26 }
 0xc7f   : > { %v1724_v29 = vpop.f32.mrb[52].mxu0 }
 0xc80   : > { %v1730_v31 = vpack.c.bf16 %v1724_v29, %v1724_v29  ;;  %v3294_v30 = vpop.f32.mrb[53].mxu0 }
 0xc81   : > { %v1727_v32 = vpop.f32.mrb[54].mxu0 }
 0xc82   : > { %v3295_v34 = vpop.f32.mrb[55].mxu0  ;;  %3299 = vmatmul.mubr.msk.bf16.vlgmr.msra.gmra.mrb[56].mxu0 %vm343_vm2, %v1730_v31 }
 0xc83   : > { %3303 = vmatpush3.bf16.msra.mxu0 %v1804_v33  ;;  %3304 = vmatprep.mubr.msk.bf16.mxu0 %vm3623_vm0, %v3622_v1 }
 0xc84   : > { %3314 = vmatprep.subr.bf16.mxu0 %v3622_v1 }
 0xc90   : > { %v1797_v35 = vpop.permute.xlu1 %1796 }
 0xc91   : > { %3305 = vmatmul.mubr.msk.bf16.vlgmr.msra.gmra.mrb[60].mxu0 %vm343_vm2, %v1797_v35 }
 0xc92   : > { %3316 = vmatprep.mubr.msk.bf16.mxu0 %vm3623_vm0, %v3622_v1 }
 0xc94   : > { %v1915_v36 = vpop.permute.xlu1 %1914 }
 0xc95   : > { %v1920_v37 = vsel %vm414_vm7, %v1915_v36, 0 }
 0xc96   : > { %3315 = vmatpush3.bf16.msra.mxu0 %v1920_v37 }
 0xc97   : > { %3326 = vmatprep.subr.bf16.mxu0 %v3622_v1 }
 0xcb5   : > { %v1913_v38 = vpop.permute.xlu1 %1912 }
 0xcb6   : > { %3317 = vmatmul.mubr.msk.bf16.vlgmr.msra.gmra.mrb[64].mxu0 %vm343_vm2, %v1913_v38 }
 0xcb7   : > { %3327 = vmatpush3.bf16.msra.mxu0 %v2036_v39  ;;  %3328 = vmatprep.mubr.msk.bf16.mxu0 %vm3623_vm0, %v3622_v1 }
 0xcb8   : > { %3338 = vmatprep.subr.bf16.mxu0 %v3622_v1 }
 0xcb9   : > { %v2147_v40 = vpop.permute.xlu1 %2146  ;;  %v2029_v41 = vpop.permute.xlu0 %2028 }
 0xcba   : > { %v2152_v42 = vsel %vm414_vm7, %v2147_v40, 0 }
 0xcbd   : > { %v2246_v43 = vpop.permute.xlu1 %2245  ;;  %v2145_v44 = vpop.permute.xlu0 %2144 }
 0xcbe   : > { %3329 = vmatmul.mubr.msk.bf16.vlgmr.msra.gmra.mrb[68].mxu0 %vm343_vm2, %v2029_v41  ;;  %v2255_v45 = vsel %vm343_vm2, %v2246_v43, 0 }
 0xcbf   : > { %3339 = vmatpush3.bf16.msra.mxu0 %v2152_v42  ;;  %3340 = vmatprep.mubr.msk.bf16.mxu0 %vm3623_vm0, %v3622_v1 }
 0xcc0   : > { %3350 = vmatprep.subr.bf16.mxu0 %v3622_v1 }
 0xcc1   : > { %v2248_v46 = vpop.permute.xlu1 %2247  ;;  %v2250_v50 = vpop.permute.xlu0 %2249 }
 0xcc2   : > { %v2258_v48 = vsel %vm343_vm2, %v2248_v46, 0  ;;  %v2261_v51 = vsel %vm343_vm2, %v2250_v50, 0 }
 0xcc5   : > { %v2244_v52 = vpop.permute.xlu1 %2243 }
 0xcc6   : > { %3341 = vmatmul.mubr.msk.bf16.vlgmr.msra.gmra.mrb[72].mxu0 %vm343_vm2, %v2145_v44 }
 0xcc7   : > { %3356 = vmatprep.mubr.msk.bf16.mxu0 %vm3623_vm0, %v3622_v1 }
 0xcc8   : > { %3351 = vmatpush3.bf16.xpose.msra.mxu0 %v2255_v45 }
 0xcc9   : > { %3352 = vmatprep.subr.bf16.mxu0 %v3622_v1 }
 0xcd0   : > { %3353 = vmatpush3.bf16.xpose.msra.mxu0 %v2258_v48 }
 0xcd1   : > { %3354 = vmatprep.subr.bf16.mxu0 %v3622_v1 }
 0xcd8   : > { %3355 = vmatpush3.bf16.xpose.msra.mxu0 %v2261_v51 }
 0xcd9   : > { %3378 = vmatprep.subr.bf16.mxu0 %v3622_v1 }
 0xcdf   : > { %3357 = vmatmul.mubr.msk.bf16.vlgmr.msra.gmra.mrb[76].mxu0 %vm343_vm2, %v2244_v52 }
 0xce0   : > { %3380 = vmatprep.mubr.msk.bf16.mxu0 %vm3623_vm0, %v3622_v1 }
 0xd55   : > { %v1772_v55 = vpop.f32.mrb[56].mxu0 }
 0xd56   : > { %v1778_v56 = vadd.f32 %v1772_v55, %v4037_v49  ;;  %v3300_v57 = vpop.f32.mrb[57].mxu0  ;;  %v2079_v49 = vld [vmem:[%s4294_s3 + $0x38] sm:$0xf] }
 0xd57   : > { %v1775_v58 = vpop.f32.mrb[58].mxu0  ;;  %v2084_v7 = vsel %vm414_vm7, %v2079_v49, 0 }
 0xd58   : > { %v3301_v59 = vpop.f32.mrb[59].mxu0 }
 0xd64   : > { %v1840_v61 = vpop.f32.mrb[60].mxu0 }
 0xd65   : > { %v1846_v62 = vpack.c.bf16 %v1840_v61, %v1840_v61  ;;  %v3306_v63 = vpop.f32.mrb[61].mxu0 }
 0xd66   : > { %v1843_v2 = vpop.f32.mrb[62].mxu0 }
 0xd67   : > { %v3307_v3 = vpop.f32.mrb[63].mxu0  ;;  %3311 = vmatmul.mubr.msk.bf16.vlgmr.msra.gmra.mrb[52].mxu1 %vm343_vm2, %v1846_v62 }
 0xd68   : > { %3321 = vmatpush3.bf16.msra.mxu1 %v1968_v0  ;;  %3322 = vmatprep.mubr.msk.bf16.mxu1 %vm3623_vm0, %v3622_v1 }
 0xd69   : > { %3332 = vmatprep.subr.bf16.mxu1 %v3622_v1 }
 0xd89   : > { %v1956_v4 = vpop.f32.mrb[64].mxu0 }
 0xd8a   : > { %v1962_v5 = vpack.c.bf16 %v1956_v4, %v1956_v4  ;;  %v3318_v6 = vpop.f32.mrb[65].mxu0 }
 0xd8b   : > { %v1959_v8 = vpop.f32.mrb[66].mxu0 }
 0xd8c   : > { %v3319_v9 = vpop.f32.mrb[67].mxu0  ;;  %3323 = vmatmul.mubr.msk.bf16.vlgmr.msra.gmra.mrb[56].mxu1 %vm343_vm2, %v1962_v5 }
 0xd8d   : > { %3333 = vmatpush3.bf16.msra.mxu1 %v2084_v7  ;;  %3334 = vmatprep.mubr.msk.bf16.mxu1 %vm3623_vm0, %v3622_v1 }
 0xd8e   : > { %3344 = vmatprep.subr.bf16.mxu1 %v3622_v1 }
 0xd91   : > { %v2072_v12 = vpop.f32.mrb[68].mxu0 }
 0xd92   : > { %v2078_v14 = vpack.c.bf16 %v2072_v12, %v2072_v12  ;;  %v3330_v15 = vpop.f32.mrb[69].mxu0 }
 0xd93   : > { %v2075_v17 = vpop.f32.mrb[70].mxu0 }
 0xd94   : > { %v3331_v18 = vpop.f32.mrb[71].mxu0  ;;  %3335 = vmatmul.mubr.msk.bf16.vlgmr.msra.gmra.mrb[60].mxu1 %vm343_vm2, %v2078_v14 }
 0xd95   : > { %3345 = vmatpush3.bf16.msra.mxu1 %v2200_v16  ;;  %3346 = vmatprep.mubr.msk.bf16.mxu1 %vm3623_vm0, %v3622_v1 }
 0xd96   : > { %3360 = vmatprep.subr.bf16.mxu1 %v3622_v1 }
 0xd99   : > { %v2188_v19 = vpop.f32.mrb[72].mxu0 }
 0xd9a   : > { %v2194_v21 = vpack.c.bf16 %v2188_v19, %v2188_v19  ;;  %v3342_v22 = vpop.f32.mrb[73].mxu0 }
 0xd9b   : > { %v2191_v23 = vpop.f32.mrb[74].mxu0 }
 0xd9c   : > { %v3343_v24 = vpop.f32.mrb[75].mxu0  ;;  %3347 = vmatmul.mubr.msk.bf16.vlgmr.msra.gmra.mrb[64].mxu1 %vm343_vm2, %v2194_v21 }
 0xd9d   : > { %3362 = vmatprep.mubr.msk.bf16.mxu1 %vm3623_vm0, %v3622_v1 }
 0xdb2   : > { %v2297_v27 = vpop.f32.mrb[76].mxu0 }
 0xdb3   : > { %v4138_v28 = vmul.f32 0.35355338, %v2297_v27  ;;  %v3358_v29 = vpop.f32.mrb[77].mxu0  ;;  %v2365_v27 = vld [vmem:[%s4294_s3 + $0xc] sm:$0xf] }
 0xdb4   : > { %v2300_v31 = vpop.f32.mrb[78].mxu0 }
 0xdb5   : > { %v3359_v30 = vpop.f32.mrb[79].mxu0  ;;  %v2304_v32 = vsel %vm343_vm2, %v4138_v28, -inf  ;;  %v2413_v33 = vsel %vm460_vm3, %v4138_v28, -inf  ;;  %v2529_v45 = vsel %vm623_vm4, %v4138_v28, -inf  ;;  %v2645_v46 = vsel %vm740_vm5, %v4138_v28, -inf }
 0xdb6   : > { %2305 = vmax.xlane.f32.xlu0 %v2304_v32  ;;  %v2761_v51 = vsel %vm858_vm6, %v4138_v28, -inf }
 0xdba   : > { %2414 = vmax.xlane.f32.xlu0 %v2413_v33 }
 0xdd0   : > { %2316 = vrot.lane.b32.xlu0 %v3745_v13, %s3634_s23 }
 0xe3a   : > { %v1888_v34 = vpop.f32.mrb[52].mxu1 }
 0xe3b   : > { %v1894_v35 = vadd.f32 %v1888_v34, %v1778_v56  ;;  %v3312_v36 = vpop.f32.mrb[53].mxu1 }
 0xe3c   : > { %v1891_v37 = vpop.f32.mrb[54].mxu1 }
 0xe3d   : > { %v3313_v11 = vpop.f32.mrb[55].mxu1 }
 0xe43   : > { %v2306_v38 = vpop.xlane.xlu0 %2305 }
 0xe44   : > { %v2307_v39 = vsub.f32 %v4138_v28, %v2306_v38 }
 0xe46   : > { %v2308_v40 = vmul.f32 1.442695, %v2307_v39 }
 0xe47   : > { %v2415_v41 = vpop.xlane.xlu0 %2414 }
 0xe48   : > { %3538 = vpow2.f32 %v2308_v40  ;;  %v2416_v48 = vsub.f32 %v4138_v28, %v2415_v41 }
 0xe4a   : > { %v2417_v55 = vmul.f32 1.442695, %v2416_v48 }
 0xe4b   : > { %v2317_v42 = vpop.permute.xlu0 %2316 }
 0xe4c   : > { %v2322_v43 = vsel %vm414_vm7, %v2317_v42, 0  ;;  %3540 = vpow2.f32 %v2417_v55 }
 0xe4d   : > { %3361 = vmatpush3.bf16.msra.mxu1 %v2322_v43 }
 0xe4e   : > { %3366 = vmatprep.subr.bf16.mxu1 %v3622_v1 }
 0xe52   : > { %v3539_v44 = vpop.eup %3538 }
 0xe53   : > { %v2310_v13 = vsel %vm343_vm2, %v3539_v44, 0.0 }
 0xe54   : > { %2311 = vadd.xlane.f32.xlu1 %v2310_v13 }
 0xe56   : > { %v3541_v63 = vpop.eup %3540 }
 0xe58   : > { %2530 = vmax.xlane.f32.xlu1 %v2529_v45 }
 0xe5c   : > { %2646 = vmax.xlane.f32.xlu1 %v2645_v46 }
 0xe5f   : > { %v2004_v50 = vpop.f32.mrb[56].mxu1 }
 0xe60   : > { %v2010_v52 = vadd.f32 %v2004_v50, %v1894_v35  ;;  %2762 = vmax.xlane.f32.xlu1 %v2761_v51  ;;  %v3324_v53 = vpop.f32.mrb[57].mxu1 }
 0xe61   : > { %v2007_v54 = vpop.f32.mrb[58].mxu1 }
 0xe62   : > { %v3325_v56 = vpop.f32.mrb[59].mxu1 }
 0xe67   : > { %v2120_v57 = vpop.f32.mrb[60].mxu1 }
 0xe68   : > { %v2126_v58 = vadd.f32 %v2120_v57, %v2010_v52  ;;  %v3336_v59 = vpop.f32.mrb[61].mxu1 }
 0xe69   : > { %v2123_v60 = vpop.f32.mrb[62].mxu1  ;;  %v2481_v59 = vld [vmem:[%s4294_s3 + $0x1c] sm:$0xf] }
 0xe6a   : > { %v3337_v61 = vpop.f32.mrb[63].mxu1  ;;  %v2486_v60 = vsel %vm414_vm7, %v2481_v59, 0 }
 0xe6b   : > { %3379 = vmatpush3.bf16.msra.mxu0 %v2486_v60 }
 0xe6c   : > { %3390 = vmatprep.subr.bf16.mxu0 %v3622_v1 }
 0xe6f   : > { %v2236_v62 = vpop.f32.mrb[64].mxu1 }
 0xe70   : > { %v4157_v0 = vadd.f32 %v2236_v62, %v2126_v58  ;;  %v3348_v2 = vpop.f32.mrb[65].mxu1 }
 0xe71   : > { %2420 = vrot.lane.b32.xlu1 %v3541_v63, %s3625_s17  ;;  %v2239_v3 = vpop.f32.mrb[66].mxu1 }
 0xe72   : > { %v3349_v49 = vpop.f32.mrb[67].mxu1 }
 0xee1   : > { %v2312_v4 = vpop.xlane.xlu1 %2311 }
 0xee2   : > { %3542 = vrcp.f32 %v2312_v4 }
 0xee5   : > { %v2531_v5 = vpop.xlane.xlu1 %2530 }
 0xee6   : > { %v2532_v6 = vsub.f32 %v4138_v28, %v2531_v5 }
 0xee8   : > { %v2533_v7 = vmul.f32 1.442695, %v2532_v6 }
 0xee9   : > { %v2647_v8 = vpop.xlane.xlu1 %2646 }
 0xeea   : > { %3544 = vpow2.f32 %v2533_v7  ;;  %v2648_v9 = vsub.f32 %v4138_v28, %v2647_v8  ;;  %v2597_v8 = vld [vmem:[%s4294_s3 + $0x2c] sm:$0xf] }
 0xeec   : > { %v3543_v10 = vpop.eup %3542  ;;  %v2649_v12 = vmul.f32 1.442695, %v2648_v9 }
 0xeed   : > { %v2314_v14 = vmul.f32 %v3543_v10, %v3539_v44  ;;  %v2763_v15 = vpop.xlane.xlu1 %2762 }
 0xeee   : > { %3546 = vpow2.f32 %v2649_v12  ;;  %v2764_v16 = vsub.f32 %v4138_v28, %v2763_v15  ;;  %v2370_v28 = vsel %vm414_vm7, %v2365_v27, 0 }
 0xeef   : > { %v2315_v17 = vpack.c.bf16 %v2314_v14, %v2314_v14  ;;  %v2602_v14 = vsel %vm414_vm7, %v2597_v8, 0 }
 0xef0   : > { %v2765_v18 = vmul.f32 1.442695, %v2764_v16 }
 0xef1   : > { %v2421_v19 = vpop.permute.xlu1 %2420  ;;  %3363 = vmatmul.mubr.msk.bf16.vlgmr.msra.gmra.mrb[68].mxu1 %vm343_vm2, %v2315_v17 }
 0xef2   : > { %3548 = vpow2.f32 %v2765_v18  ;;  %v2423_v21 = vsel %vm343_vm2, %v2421_v19, 0.0  ;;  %3368 = vmatprep.mubr.msk.bf16.mxu1 %vm3623_vm0, %v3622_v1  ;;  %3367 = vmatpush3.bf16.msra.mxu1 %v2370_v28 }
 0xef3   : > { %2424 = vadd.xlane.f32.xlu1 %v2423_v21  ;;  %3372 = vmatprep.subr.bf16.mxu1 %v3622_v1 }
 0xef4   : > { %v3545_v22 = vpop.eup %3544 }
 0xef5   : > { %2536 = vrot.lane.b32.xlu0 %v3545_v22, %s3627_s25 }
 0xef8   : > { %v3547_v23 = vpop.eup %3546 }
 0xef9   : > { %2652 = vrot.lane.b32.xlu0 %v3547_v23, %s3628_s26 }
 0xefc   : > { %v3549_v24 = vpop.eup %3548 }
 0xefd   : > { %2768 = vrot.lane.b32.xlu0 %v3549_v24, %s3624_s16 }
 0xf04   : > { %2432 = vrot.lane.b32.xlu1 %v3779_v47, %s3634_s23 }
 0xf08   : > { %2548 = vrot.lane.b32.xlu1 %v3749_v20, %s3634_s23 }
 0xf67   : > { %v2537_v29 = vpop.permute.xlu0 %2536 }
 0xf68   : > { %v2539_v31 = vsel %vm343_vm2, %v2537_v29, 0.0 }
 0xf69   : > { %2540 = vadd.xlane.f32.xlu0 %v2539_v31 }
 0xf6b   : > { %v2653_v30 = vpop.permute.xlu0 %2652 }
 0xf6c   : > { %v2655_v32 = vsel %vm343_vm2, %v2653_v30, 0.0 }
 0xf6d   : > { %2656 = vadd.xlane.f32.xlu0 %v2655_v32 }
 0xf6f   : > { %v2769_v47 = vpop.permute.xlu0 %2768 }
 0xf70   : > { %v2771_v20 = vsel %vm343_vm2, %v2769_v47, 0.0 }
 0xf71   : > { %2772 = vadd.xlane.f32.xlu0 %v2771_v20 }
 0xf80   : > { %v2425_v33 = vpop.xlane.xlu1 %2424 }
 0xf81   : > { %3550 = vrcp.f32 %v2425_v33 }
 0xf84   : > { %v2433_v37 = vpop.permute.xlu1 %2432 }
 0xf85   : > { %v2438_v41 = vsel %vm414_vm7, %v2433_v37, 0 }
 0xf88   : > { %v2549_v45 = vpop.permute.xlu1 %2548 }
 0xf89   : > { %v2554_v51 = vsel %vm414_vm7, %v2549_v45, 0 }
 0xf8b   : > { %v3551_v34 = vpop.eup %3550 }
 0xf8c   : > { %v2427_v35 = vmul.f32 %v3551_v34, %v3541_v63 }
 0xf8e   : > { %v2428_v36 = vpack.c.bf16 %v2427_v35, %v2427_v35 }
 0xf90   : > { %2430 = vrot.lane.b32.xlu0 %v2428_v36, %s3625_s17 }
 0xfc4   : > { %v2358_v11 = vpop.f32.mrb[68].mxu1 }
 0xfc5   : > { %v2364_v38 = vpack.c.bf16 %v2358_v11, %v2358_v11  ;;  %v3364_v39 = vpop.f32.mrb[69].mxu1 }
 0xfc6   : > { %v2361_v40 = vpop.f32.mrb[70].mxu1 }
 0xfc7   : > { %v3365_v42 = vpop.f32.mrb[71].mxu1  ;;  %3369 = vmatmul.mubr.msk.bf16.vlgmr.msra.gmra.mrb[72].mxu1 %vm343_vm2, %v2364_v38 }
 0xfc8   : > { %3373 = vmatpush3.bf16.msra.mxu1 %v2438_v41  ;;  %3374 = vmatprep.mubr.msk.bf16.mxu1 %vm3623_vm0, %v3622_v1 }
 0xfc9   : > { %3384 = vmatprep.subr.bf16.mxu1 %v3622_v1 }
 0xff6   : > { %v2541_v43 = vpop.xlane.xlu0 %2540 }
 0xff7   : > { %3552 = vrcp.f32 %v2541_v43 }
 0xffa   : > { %v2657_v44 = vpop.xlane.xlu0 %2656 }
 0xffb   : > { %3554 = vrcp.f32 %v2657_v44 }
 0xffe   : > { %v2773_v13 = vpop.xlane.xlu0 %2772 }
 0xfff   : > { %3556 = vrcp.f32 %v2773_v13 }
0x1001   : > { %v3553_v46 = vpop.eup %3552 }
0x1002   : > { %v2431_v48 = vpop.permute.xlu0 %2430  ;;  %v2543_v50 = vmul.f32 %v3553_v46, %v3545_v22 }
0x1003   : > { %3375 = vmatmul.mubr.msk.bf16.vlgmr.msra.gmra.mrb[76].mxu1 %vm343_vm2, %v2431_v48 }
0x1004   : > { %3385 = vmatpush3.bf16.msra.mxu1 %v2554_v51  ;;  %v2544_v52 = vpack.c.bf16 %v2543_v50, %v2543_v50  ;;  %3386 = vmatprep.mubr.msk.bf16.mxu1 %vm3623_vm0, %v3622_v1  ;;  %v3018_v51 = vld [vmem:[%s4295_s4] ss:$0 sm:$0xff] }
0x1005   : > { %v3555_v53 = vpop.eup %3554  ;;  %3396 = vmatprep.subr.bf16.mxu1 %v3622_v1 }
0x1006   : > { %2546 = vrot.lane.b32.xlu1 %v2544_v52, %s3627_s25  ;;  %v2659_v54 = vmul.f32 %v3555_v53, %v3547_v23  ;;  %s3635_s25 = smov [#allocation2]  }
0x1008   : > { %v2660_v55 = vpack.c.bf16 %v2659_v54, %v2659_v54 }
0x1009   : > { %v3557_v56 = vpop.eup %3556 }
0x100a   : > { %2664 = vrot.lane.b32.xlu1 %v3812_v26, %s3634_s23  ;;  %2662 = vrot.lane.b32.xlu0 %v2660_v55, %s3628_s26  ;;  %v2775_v57 = vmul.f32 %v3557_v56, %v3549_v24  ;;  %v2829_v24 = vld [vmem:[%s4294_s3 + $0x4c] sm:$0xf]  ;;  %s3562_s26 = sshll.u32 %s3635_s25, 4  ;;  %s3563_s26 = int_to_ptr.vmem [resolvable:$false] %s3562_s26 }
0x100b   : > { %v2834_v31 = vsel %vm414_vm7, %v2829_v24, 0  ;;  %s3564_s8 = scalar_lea.vmem %s3563_s26, 256 }
0x100c   : > { %v2776_v58 = vpack.c.bf16 %v2775_v57, %v2775_v57 }
0x100e   : > { %2780 = vrot.lane.b32.xlu1 %v3753_v25, %s3634_s23  ;;  %2778 = vrot.lane.b32.xlu0 %v2776_v58, %s3624_s16  ;;  %s217_s23 = scalar_lea.vmem [#allocation2], %s2963_s12 }
0x100f   : > { %s2900_s30 = sshll.u32 %s217_s23, 4  ;;  %s4250_s30 = int_to_ptr.vmem [resolvable:$true] %s2900_s30 }
0x1010   : > { %s3558_s16 = scalar_lea.vmem %s4250_s30, 128  ;;  %p3565_p0 = scmp.lt.s32.totalorder %s4250_s30, %s3563_s26 }
0x1011   : > { %p3559_p11 = scmp.ne.s32.totalorder %s4250_s30, %s3558_s16  ;;  %p3566_p1 = scmp.lt.s32.totalorder %s3564_s8, %s3558_s16 }
0x1013   : > { %p3560_p12 = pnand %p3559_p11, %p3704_p5  ;;  %p3567_p2 = por %p3566_p1, %p3565_p0 }
0x1015   : > { %p3561_p13 = pneg %p3560_p12 }
0x1017   : > { %p3568_p3 = pnand %p3567_p2, %p3561_p13 }
0x1078   : > { %v2547_v61 = vpop.permute.xlu1 %2546 }
0x1079   : > { %3387 = vmatmul.mubr.msk.bf16.vlgmr.msra.gmra.mrb[80].mxu1 %vm343_vm2, %v2547_v61 }
0x107a   : > { %3398 = vmatprep.mubr.msk.bf16.mxu1 %vm3623_vm0, %v3622_v1 }
0x107c   : > { %v2665_v26 = vpop.permute.xlu1 %2664  ;;  %v2663_v62 = vpop.permute.xlu0 %2662 }
0x107d   : > { %v2670_v25 = vsel %vm414_vm7, %v2665_v26, 0 }
0x107e   : > { %3397 = vmatpush3.bf16.msra.mxu1 %v2670_v25 }
0x107f   : > { %3408 = vmatprep.subr.bf16.mxu1 %v3622_v1 }
0x1080   : > { %v2781_v63 = vpop.permute.xlu1 %2780  ;;  %v2779_v3 = vpop.permute.xlu0 %2778 }
0x1081   : > { %v2786_v2 = vsel %vm414_vm7, %v2781_v63, 0  ;;  %3399 = vmatmul.mubr.msk.bf16.vlgmr.msra.gmra.mrb[84].mxu1 %vm343_vm2, %v2663_v62 }
0x1082   : > { %3409 = vmatpush3.bf16.msra.mxu1 %v2786_v2  ;;  %3410 = vmatprep.mubr.msk.bf16.mxu1 %vm3623_vm0, %v3622_v1 }
0x1089   : > { %3411 = vmatmul.mubr.msk.bf16.vlgmr.msra.gmra.mrb[88].mxu1 %vm343_vm2, %v2779_v3 }
0x109a   : > { %v2406_v49 = vpop.f32.mrb[72].mxu1 }
0x109b   : > { %v2412_v4 = vadd.f32 %v2406_v49, %v4157_v0  ;;  %v3370_v5 = vpop.f32.mrb[73].mxu1  ;;  %v2713_v0 = vld [vmem:[%s4294_s3 + $0x3c] sm:$0xf] }
0x109c   : > { %v2409_v6 = vpop.f32.mrb[74].mxu1  ;;  %v2718_v21 = vsel %vm414_vm7, %v2713_v0, 0 }
0x109d   : > { %v3371_v7 = vpop.f32.mrb[75].mxu1 }
0x10d6   : > { %v2474_v9 = vpop.f32.mrb[76].mxu1 }
0x10d7   : > { %v2480_v10 = vpack.c.bf16 %v2474_v9, %v2474_v9  ;;  %v3376_v12 = vpop.f32.mrb[77].mxu1 }
0x10d8   : > { %v2477_v15 = vpop.f32.mrb[78].mxu1 }
0x10d9   : > { %v3377_v16 = vpop.f32.mrb[79].mxu1  ;;  %3381 = vmatmul.mubr.msk.bf16.vlgmr.msra.gmra.mrb[80].mxu0 %vm343_vm2, %v2480_v10 }
0x10da   : > { %3391 = vmatpush3.bf16.msra.mxu0 %v2602_v14  ;;  %3392 = vmatprep.mubr.msk.bf16.mxu0 %vm3623_vm0, %v3622_v1 }
0x10db   : > { %3402 = vmatprep.subr.bf16.mxu0 %v3622_v1 }
0x114c   : > { %v2590_v17 = vpop.f32.mrb[80].mxu1 }
0x114d   : > { %v2596_v18 = vpack.c.bf16 %v2590_v17, %v2590_v17  ;;  %v3388_v19 = vpop.f32.mrb[81].mxu1 }
0x114e   : > { %v2593_v22 = vpop.f32.mrb[82].mxu1 }
0x114f   : > { %v3389_v23 = vpop.f32.mrb[83].mxu1  ;;  %3393 = vmatmul.mubr.msk.bf16.vlgmr.msra.gmra.mrb[84].mxu0 %vm343_vm2, %v2596_v18 }
0x1150   : > { %3403 = vmatpush3.bf16.msra.mxu0 %v2718_v21  ;;  %3404 = vmatprep.mubr.msk.bf16.mxu0 %vm3623_vm0, %v3622_v1 }
0x1151   : > { %3414 = vmatprep.subr.bf16.mxu0 %v3622_v1 }
0x1154   : > { %v2706_v27 = vpop.f32.mrb[84].mxu1 }
0x1155   : > { %v2712_v28 = vpack.c.bf16 %v2706_v27, %v2706_v27  ;;  %v3400_v29 = vpop.f32.mrb[85].mxu1 }
0x1156   : > { %v2709_v30 = vpop.f32.mrb[86].mxu1 }
0x1157   : > { %v3401_v32 = vpop.f32.mrb[87].mxu1  ;;  %3405 = vmatmul.mubr.msk.bf16.vlgmr.msra.gmra.mrb[88].mxu0 %vm343_vm2, %v2712_v28 }
0x1158   : > { %3415 = vmatpush3.bf16.msra.mxu0 %v2834_v31  ;;  %3416 = vmatprep.mubr.msk.bf16.mxu0 %vm3623_vm0, %v3622_v1 }
0x115c   : > { %v2822_v47 = vpop.f32.mrb[88].mxu1 }
0x115d   : > { %v2828_v20 = vpack.c.bf16 %v2822_v47, %v2822_v47  ;;  %v3412_v33 = vpop.f32.mrb[89].mxu1 }
0x115e   : > { %v2825_v34 = vpop.f32.mrb[90].mxu1 }
0x115f   : > { %v3413_v35 = vpop.f32.mrb[91].mxu1  ;;  %3417 = vmatmul.mubr.msk.bf16.vlgmr.msra.gmra.mrb[92].mxu0 %vm343_vm2, %v2828_v20 }
0x11ac   : > { %v2522_v36 = vpop.f32.mrb[80].mxu0 }
0x11ad   : > { %v2528_v37 = vadd.f32 %v2522_v36, %v2412_v4  ;;  %v3382_v11 = vpop.f32.mrb[81].mxu0 }
0x11ae   : > { %v2525_v38 = vpop.f32.mrb[82].mxu0 }
0x11af   : > { %v3383_v39 = vpop.f32.mrb[83].mxu0 }
0x1222   : > { %v2638_v40 = vpop.f32.mrb[84].mxu0 }
0x1223   : > { %v2644_v41 = vadd.f32 %v2638_v40, %v2528_v37  ;;  %v3394_v42 = vpop.f32.mrb[85].mxu0 }
0x1224   : > { %v2641_v43 = vpop.f32.mrb[86].mxu0 }
0x1225   : > { %v3395_v44 = vpop.f32.mrb[87].mxu0 }
0x122a   : > { %v2754_v1 = vpop.f32.mrb[88].mxu0 }
0x122b   : > { %v2760_v13 = vadd.f32 %v2754_v1, %v2644_v41  ;;  %v3406_v45 = vpop.f32.mrb[89].mxu0 }
0x122c   : > { %v2757_v46 = vpop.f32.mrb[90].mxu0 }
0x122d   : > { %v3407_v48 = vpop.f32.mrb[91].mxu0 }
0x1232   : > { %v2870_v50 = vpop.f32.mrb[92].mxu0 }
0x1233   : > { %v2876_v52 = vadd.f32 %v2870_v50, %v2760_v13  ;;  %v3418_v53 = vpop.f32.mrb[93].mxu0 }
0x1234   : > { %v2873_v54 = vpop.f32.mrb[94].mxu0 }
0x1235   : > { %v2884_v55 = vadd.f32 %v3018_v51, %v2876_v52  ;;  %v3419_v56 = vpop.f32.mrb[95].mxu0 }
0x1237   : > { %2885 = vst.msk [vmem:[%s217_s23] sm:$0xff] %vm265_vm1, %v2884_v55 }
0x1238   : > { %3571 = shalt.err (!%p3568_p3)
}
0x1239   : > { %s3572_s9 = scalar_lea.hbm %s4248_s7, 128  ;;  %s3576_s12 = scalar_lea.hbm %s4296_s5, 256 }
0x123a   : > { %p3573_p4 = scmp.ne.s32.totalorder %s4248_s7, %s3572_s9  ;;  %p3577_p9 = scmp.lt.u32.totalorder %s4248_s7, %s4296_s5 }
0x123b   : > { %p3578_p10 = scmp.lt.u32.totalorder %s3576_s12, %s3572_s9  ;;  %p3580_p12 = scmp.lt.u32.totalorder %s3572_s9, %s4248_s7 }
0x123c   : > { %p3574_p7 = pnand %p3573_p4, %p3704_p5 }
0x123d   : > { %p3579_p11 = por %p3578_p10, %p3577_p9 }
0x123e   : > { %p3575_p8 = pneg %p3574_p7 }
0x123f   : > { %p3581_p13 = por %p3580_p12, %p3579_p11 }
0x1241   : > { %p3582_p0 = pnand %p3581_p13, %p3575_p8 }
0x1243   : > { %3585 = shalt.err (!%p3582_p0)
}
0x1244   : > { %3421 = dma.vmem_to_hbm [thread:$0]  (%p3704_p5), %s4250_s30, 128, %s4248_s7, %s2887_s22  }
0x1245 PF: > { %p3427_p1 = scmp.ge.s32.totalorder %s3620_s21, 2  ;;  %s2912_s15 = sand.u32 1, %s3608_s18  }
0x1246   : > { %s2913_s23 = scalar_lea.sflag [#allocation3], %s2912_s15 }
0x1247   : > { %p3424_p2 = pnand %p3427_p1, %p3708_p6 }
0x1249   : > { %3603 = dma.done.wait (!%p3424_p2), %s2913_s23, 128  }
0x124a   : > { %3605 = vsyncadd (!%p3424_p2), %s2913_s23, 4294967168  ;;  %p15_p3 = scmp.ge.s32.totalorder %s3691_s24, 4   ;;  %s4299_s18 = smov %s3612_s19 }
0x124b   : > { %s4300_s19 = smov %s3616_s20  ;;  %s4301_s20 = smov %s3702_s27 }
0x124c   : > { %s4302_s21 = smov %s3691_s24  ;;  %17 = sbr.rel (!%p15_p3) target bundleno = 3 (0x3), region = 75 }
0x1253   :  { %2918 = vsyncpa [#allocation3], 1 }
0x1254   :  { %2920 = vsyncpa [#allocation3 + $0x1], 1 }

</bundles_post_ra>
